<compile_context>
chip_gen: v6e
topology: v6e:2x2x1
jax: 0.10.0
libtpu: 0.0.40
codegen_flags: <defaults>
</compile_context>

<pallas_src>
import jax
import jax.numpy as jnp
from jax import lax
from jax.experimental import pallas as pl
from jax.experimental.pallas import tpu as pltpu

FEATURE_DIM = 128
CONV_OUT_CH = 16
KSIZE = 3
IMG = 10                      # module hard-codes size_linear_unit(10) -> 10x10 input
OUT_HW = IMG - (KSIZE - 1)    # 8
NUM_LINEAR = OUT_HW * OUT_HW * CONV_OUT_CH   # 1024


# ------------------------------ Pallas kernel ------------------------------

def _fused_kernel(x_ref, wc_ref, bc_ref, wfc_ref, bfc_ref,
                  w1_ref, b1_ref, wq_ref, qb_ref, q_ref):
    """conv(as dense matmul)+relu -> fc_hidden+relu -> batched SF layer1+relu
    -> folded (lambda-mixed) value/reward head.

    x_ref  : (TB, Cin*100)      wc_ref : (Cin*100, 1024)   bc_ref : (1, 1024)
    wfc_ref: (1024, 128)        bfc_ref: (1, 128)
    w1_ref : (128, A*H)         b1_ref : (1, A*H)
    wq_ref : (A*H, A)           qb_ref : (1, A)            q_ref  : (TB, A)
    MXU accumulation is f32; all elementwise math is f32 (v5e-safe).
    """
    cd = wc_ref.dtype

    # conv lowered to a dense matmul whose output is already the NCHW
    # x.view(N, -1) flatten layout (lane-dense 1024 columns).
    conv = jnp.dot(x_ref[...], wc_ref[...], preferred_element_type=jnp.float32)
    conv = jnp.maximum(conv + bc_ref[...], 0.0)                         # (TB, 1024)

    phi = jnp.dot(conv.astype(cd), wfc_ref[...], preferred_element_type=jnp.float32)
    phi = jnp.maximum(phi + bfc_ref[...], 0.0)                          # (TB, 128)

    h = jnp.dot(phi.astype(cd), w1_ref[...], preferred_element_type=jnp.float32)
    h = jnp.maximum(h + b1_ref[...], 0.0)                               # (TB, A*H)

    q = jnp.dot(h.astype(cd), wq_ref[...], preferred_element_type=jnp.float32)
    q_ref[...] = q + qb_ref[...]                                        # (TB, A)


# ------------------------------- JAX wrapper --------------------------------

def lqnet_shareR_forward(x, sf_lambda, params, compute_dtype=jnp.float32):
    """Returns lsf_qvec of shape (N, num_actions) — same as LQNet_shareR.forward."""
    n = x.shape[0]
    kin = x.shape[1] * x.shape[2] * x.shape[3]
    num_actions = params["Vq"].shape[1]
    ah = params["Vq"].shape[0]              # A * sf_hidden
    d = FEATURE_DIM
    nl = NUM_LINEAR

    x_flat = x.reshape(n, kin)              # pure NCHW flatten, no transpose

    # Mix lambda once on the host into the folded head (tiny elementwise op).
    lam = jnp.asarray(sf_lambda, jnp.float32)
    wq = (1.0 - lam) * params["Vq"] + lam * params["Rq"]     # (A*H, A)
    qb = (1.0 - lam) * params["cv"] + lam * params["cr"]     # (1, A)

    cd = compute_dtype
    xc = x_flat.astype(cd)
    wc = params["Wc"].astype(cd)
    wfc = params["wfcT"].astype(cd)
    w1 = params["w1_cat"].astype(cd)
    wqc = wq.astype(cd)
    bc, bfc, b1c = params["bc"], params["bfc"], params["b1_cat"]   # biases stay f32

    # Batch tiling: one "parallel" grid axis (v7x megacore shards it);
    # the tile is sized comfortably under v7x's 64 MiB VMEM.
    tb = n if n <= 256 else 256
    grid = (pl.cdiv(n, tb),)

    def const(shape):
        return pl.BlockSpec(shape, lambda i: (0, 0))

    q = pl.pallas_call(
        _fused_kernel,
        out_shape=jax.ShapeDtypeStruct((n, num_actions), jnp.float32),
        grid=grid,
        in_specs=[
            pl.BlockSpec((tb, kin), lambda i: (i, 0)),          # x tile
            const((kin, nl)), const((1, nl)),                   # dense conv op + bias
            const((nl, d)), const((1, d)),                      # fc_hidden
            const((d, ah)), const((1, ah)),                     # batched SF layer 1
            const((ah, num_actions)), const((1, num_actions)),  # folded head
        ],
        out_specs=pl.BlockSpec((tb, num_actions), lambda i: (i, 0)),
        compiler_params=pltpu.CompilerParams(
            dimension_semantics=("parallel",)),
    )(xc, wc, bc, wfc, bfc, w1, b1c, wqc, qb)
    return q


# ------------------------ deterministic parameters --------------------------

def init_params(key, in_channels, num_actions, sf_hidden):
    d = FEATURE_DIM
    hp = lax.Precision.HIGHEST
    ks = jax.random.split(key, 10)
    conv_w = 0.10 * jax.random.normal(ks[0], (CONV_OUT_CH, in_channels, KSIZE, KSIZE), jnp.float32)
    conv_b = 0.10 * jax.random.normal(ks[1], (CONV_OUT_CH,), jnp.float32)
    wfc = 0.02 * jax.random.normal(ks[2], (d, NUM_LINEAR), jnp.float32)
    bfc = 0.02 * jax.random.normal(ks[3], (d,), jnp.float32)
    # per-action SF MLP: Linear(d, hidden) + ReLU + Linear(hidden, d)
    w1 = 0.05 * jax.random.normal(ks[4], (num_actions, sf_hidden, d), jnp.float32)
    b1 = 0.05 * jax.random.normal(ks[5], (num_actions, sf_hidden), jnp.float32)
    w2 = 0.05 * jax.random.normal(ks[6], (num_actions, d, sf_hidden), jnp.float32)
    b2 = 0.05 * jax.random.normal(ks[7], (num_actions, d), jnp.float32)
    wv = 0.05 * jax.random.normal(ks[8], (num_actions, d), jnp.float32)   # value_fn, no bias
    wr = 0.05 * jax.random.normal(ks[9], (1, d), jnp.float32)             # reward_fn, no bias

    w1T = jnp.transpose(w1, (0, 2, 1))          # (A, d, hidden)
    w2T = jnp.transpose(w2, (0, 2, 1))          # (A, hidden, d)

    # ---- one-time algebraic prep for the fused kernel ----
    # (1) dense conv operator with output columns in NCHW-flatten order
    #     (column j = c_out*64 + oh*8 + ow) built by convolving the identity basis.
    nin = in_channels * IMG * IMG
    eye = jnp.eye(nin, dtype=jnp.float32).reshape(nin, in_channels, IMG, IMG)
    Wc = lax.conv_general_dilated(
        eye, conv_w, (1, 1), "VALID",
        dimension_numbers=("NCHW", "OIHW", "NCHW"),
        precision=hp).reshape(nin, NUM_LINEAR)                    # (Cin*100, 1024)
    bc = jnp.repeat(conv_b, OUT_HW * OUT_HW).reshape(1, NUM_LINEAR)

    # (2) per-action first SF layers concatenated into one matmul
    w1_cat = jnp.transpose(w1T, (1, 0, 2)).reshape(d, num_actions * sf_hidden)
    b1_cat = b1.reshape(1, num_actions * sf_hidden)

    # (3) fold the second SF layer into the value/reward heads
    v_eff = jnp.einsum("ahd,ad->ah", w2T, wv, precision=hp)       # (A, hidden)
    r_eff = jnp.einsum("ahd,d->ah", w2T, wr[0], precision=hp)     # (A, hidden)
    c_v = jnp.einsum("ad,ad->a", b2, wv, precision=hp)            # (A,)
    c_r = jnp.dot(b2, wr[0], precision=hp)                        # (A,)
    eyeA = jnp.eye(num_actions, dtype=jnp.float32)
    Vq = (v_eff[:, :, None] * eyeA[:, None, :]).reshape(num_actions * sf_hidden, num_actions)
    Rq = (r_eff[:, :, None] * eyeA[:, None, :]).reshape(num_actions * sf_hidden, num_actions)

    return dict(
        # raw params (used by the pure-JAX reference)
        conv_w=conv_w, conv_b=conv_b,
        wfcT=wfc.T, bfc=bfc.reshape(1, d),
        w1T=w1T, b1=b1, w2T=w2T, b2=b2, wv=wv, wr=wr,
        # fused-kernel params
        Wc=Wc, bc=bc, w1_cat=w1_cat, b1_cat=b1_cat,
        Vq=Vq, Rq=Rq,
        cv=c_v.reshape(1, num_actions), cr=c_r.reshape(1, num_actions))


# -------------------------------- reference ---------------------------------

def reference_forward(x, sf_lambda, params):
    hp = lax.Precision.HIGHEST
    conv = lax.conv_general_dilated(x, params["conv_w"], (1, 1), "VALID",
                                    dimension_numbers=("NCHW", "OIHW", "NCHW"),
                                    precision=hp)
    conv = jax.nn.relu(conv + params["conv_b"][None, :, None, None])
    flat = conv.reshape(conv.shape[0], -1)
    phi = jax.nn.relu(jnp.dot(flat, params["wfcT"], precision=hp) + params["bfc"])
    num_actions = params["wv"].shape[0]
    sf_phi = []
    for a in range(num_actions):
        h = jax.nn.relu(jnp.dot(phi, params["w1T"][a], precision=hp) + params["b1"][a])
        sf_phi.append(jnp.dot(h, params["w2T"][a], precision=hp) + params["b2"][a])
    sf_phi = jnp.stack(sf_phi, axis=1)                            # (N, A, d)
    all_v = jnp.einsum("nad,kd->nak", sf_phi, params["wv"], precision=hp)
    sf_v = jnp.diagonal(all_v, axis1=-2, axis2=-1)
    sf_r = jnp.einsum("nad,d->na", sf_phi, params["wr"][0], precision=hp)
    return (1.0 - sf_lambda) * sf_v + sf_lambda * sf_r


# ---------------------------------- main -------------------------------------

if __name__ == "__main__":
    in_channels = 4
    num_actions = 4
    sf_hidden = 64          # sf_hidden_sizes = [64]
    batch = 2
    sf_lambda = 0.5

    key = jax.random.PRNGKey(0)
    kx, kp = jax.random.split(key)
    x = jax.random.normal(kx, (batch, in_channels, IMG, IMG), jnp.float32)
    params = init_params(kp, in_channels, num_actions, sf_hidden)

    fwd = jax.jit(lqnet_shareR_forward, static_argnames=("compute_dtype",))

    # f32 path (exact module semantics)
    q = jax.block_until_ready(fwd(x, sf_lambda, params))
    q_ref = reference_forward(x, sf_lambda, params)
    assert q.shape == (batch, num_actions)
    assert jnp.allclose(q, q_ref, atol=2e-4, rtol=2e-4), (q, q_ref)

    # bf16 MXU-operand path (v6e/v7x throughput; v5e-safe since elementwise is f32)
    q_bf16 = jax.block_until_ready(fwd(x, sf_lambda, params, compute_dtype=jnp.bfloat16))
    assert q_bf16.shape == (batch, num_actions)
    assert jnp.allclose(q_bf16, q_ref, atol=5e-2, rtol=5e-2), (q_bf16, q_ref)

    print("KERNEL_OK")
</pallas_src>

<mosaic_0001>
module attributes {stable_mosaic.version = 11 : i64} {
  func.func @_fused_kernel(%arg0: i32, %arg1: memref<2x400xf32, #tpu.memory_space<vmem>>, %arg2: memref<400x1024xf32, #tpu.memory_space<vmem>>, %arg3: memref<1x1024xf32, #tpu.memory_space<vmem>>, %arg4: memref<1024x128xf32, #tpu.memory_space<vmem>>, %arg5: memref<1x128xf32, #tpu.memory_space<vmem>>, %arg6: memref<128x256xf32, #tpu.memory_space<vmem>>, %arg7: memref<1x256xf32, #tpu.memory_space<vmem>>, %arg8: memref<256x4xf32, #tpu.memory_space<vmem>>, %arg9: memref<1x4xf32, #tpu.memory_space<vmem>>, %arg10: memref<2x4xf32, #tpu.memory_space<vmem>>) attributes {dimension_semantics = [#tpu.dimension_semantics<parallel>], iteration_bounds = array<i64: 1>, scalar_prefetch = 0 : i64, scratch_operands = 0 : i64, tpu.core_type = #tpu.core_type<tc>, window_params = [{transform_indices = @transform_0, window_bounds = array<i64: 2, 400>}, {pipeline_mode = #tpu.pipeline_mode<synchronous>, transform_indices = @transform_1, window_bounds = array<i64: 400, 1024>}, {pipeline_mode = #tpu.pipeline_mode<synchronous>, transform_indices = @transform_2, window_bounds = array<i64: 1, 1024>}, {pipeline_mode = #tpu.pipeline_mode<synchronous>, transform_indices = @transform_3, window_bounds = array<i64: 1024, 128>}, {pipeline_mode = #tpu.pipeline_mode<synchronous>, transform_indices = @transform_4, window_bounds = array<i64: 1, 128>}, {pipeline_mode = #tpu.pipeline_mode<synchronous>, transform_indices = @transform_5, window_bounds = array<i64: 128, 256>}, {pipeline_mode = #tpu.pipeline_mode<synchronous>, transform_indices = @transform_6, window_bounds = array<i64: 1, 256>}, {pipeline_mode = #tpu.pipeline_mode<synchronous>, transform_indices = @transform_7, window_bounds = array<i64: 256, 4>}, {pipeline_mode = #tpu.pipeline_mode<synchronous>, transform_indices = @transform_8, window_bounds = array<i64: 1, 4>}, {transform_indices = @transform_9, window_bounds = array<i64: 2, 4>}]} {
    %c0 = arith.constant 0 : index
    %c0_0 = arith.constant 0 : index
    %0 = vector.load %arg1[%c0, %c0_0] : memref<2x400xf32, #tpu.memory_space<vmem>>, vector<2x400xf32>
    %c0_1 = arith.constant 0 : index
    %c0_2 = arith.constant 0 : index
    %1 = vector.load %arg2[%c0_1, %c0_2] : memref<400x1024xf32, #tpu.memory_space<vmem>>, vector<400x1024xf32>
    %cst = arith.constant dense<0.000000e+00> : vector<2x1024xf32>
    %2 = tpu.matmul %0, %1, %cst {dimension_numbers = #tpu.dot_dimension_numbers<[1], [0], [0], [1], [0, 0, 1, 1], [], []>} : vector<2x400xf32>, vector<400x1024xf32>, vector<2x1024xf32> -> vector<2x1024xf32>
    %c0_3 = arith.constant 0 : index
    %c0_4 = arith.constant 0 : index
    %3 = vector.load %arg3[%c0_3, %c0_4] : memref<1x1024xf32, #tpu.memory_space<vmem>>, vector<1x1024xf32>
    %4 = vector.broadcast %3 : vector<1x1024xf32> to vector<2x1024xf32>
    %5 = arith.addf %2, %4 : vector<2x1024xf32>
    %cst_5 = arith.constant 0.000000e+00 : f32
    %6 = vector.broadcast %cst_5 : f32 to vector<2x1024xf32>
    %7 = arith.maximumf %5, %6 : vector<2x1024xf32>
    %c0_6 = arith.constant 0 : index
    %c0_7 = arith.constant 0 : index
    %8 = vector.load %arg4[%c0_6, %c0_7] : memref<1024x128xf32, #tpu.memory_space<vmem>>, vector<1024x128xf32>
    %cst_8 = arith.constant dense<0.000000e+00> : vector<2x128xf32>
    %9 = tpu.matmul %7, %8, %cst_8 {dimension_numbers = #tpu.dot_dimension_numbers<[1], [0], [0], [1], [0, 0, 1, 1], [], []>} : vector<2x1024xf32>, vector<1024x128xf32>, vector<2x128xf32> -> vector<2x128xf32>
    %c0_9 = arith.constant 0 : index
    %c0_10 = arith.constant 0 : index
    %10 = vector.load %arg5[%c0_9, %c0_10] : memref<1x128xf32, #tpu.memory_space<vmem>>, vector<1x128xf32>
    %11 = vector.broadcast %10 : vector<1x128xf32> to vector<2x128xf32>
    %12 = arith.addf %9, %11 : vector<2x128xf32>
    %cst_11 = arith.constant 0.000000e+00 : f32
    %13 = vector.broadcast %cst_11 : f32 to vector<2x128xf32>
    %14 = arith.maximumf %12, %13 : vector<2x128xf32>
    %c0_12 = arith.constant 0 : index
    %c0_13 = arith.constant 0 : index
    %15 = vector.load %arg6[%c0_12, %c0_13] : memref<128x256xf32, #tpu.memory_space<vmem>>, vector<128x256xf32>
    %cst_14 = arith.constant dense<0.000000e+00> : vector<2x256xf32>
    %16 = tpu.matmul %14, %15, %cst_14 {dimension_numbers = #tpu.dot_dimension_numbers<[1], [0], [0], [1], [0, 0, 1, 1], [], []>} : vector<2x128xf32>, vector<128x256xf32>, vector<2x256xf32> -> vector<2x256xf32>
    %c0_15 = arith.constant 0 : index
    %c0_16 = arith.constant 0 : index
    %17 = vector.load %arg7[%c0_15, %c0_16] : memref<1x256xf32, #tpu.memory_space<vmem>>, vector<1x256xf32>
    %18 = vector.broadcast %17 : vector<1x256xf32> to vector<2x256xf32>
    %19 = arith.addf %16, %18 : vector<2x256xf32>
    %cst_17 = arith.constant 0.000000e+00 : f32
    %20 = vector.broadcast %cst_17 : f32 to vector<2x256xf32>
    %21 = arith.maximumf %19, %20 : vector<2x256xf32>
    %c0_18 = arith.constant 0 : index
    %c0_19 = arith.constant 0 : index
    %22 = vector.load %arg8[%c0_18, %c0_19] : memref<256x4xf32, #tpu.memory_space<vmem>>, vector<256x4xf32>
    %cst_20 = arith.constant dense<0.000000e+00> : vector<2x4xf32>
    %23 = tpu.matmul %21, %22, %cst_20 {dimension_numbers = #tpu.dot_dimension_numbers<[1], [0], [0], [1], [0, 0, 1, 1], [], []>} : vector<2x256xf32>, vector<256x4xf32>, vector<2x4xf32> -> vector<2x4xf32>
    %c0_21 = arith.constant 0 : index
    %c0_22 = arith.constant 0 : index
    %24 = vector.load %arg9[%c0_21, %c0_22] : memref<1x4xf32, #tpu.memory_space<vmem>>, vector<1x4xf32>
    %25 = vector.broadcast %24 : vector<1x4xf32> to vector<2x4xf32>
    %26 = arith.addf %23, %25 : vector<2x4xf32>
    %c0_23 = arith.constant 0 : index
    %c0_24 = arith.constant 0 : index
    %27 = vector.load %arg10[%c0_23, %c0_24] : memref<2x4xf32, #tpu.memory_space<vmem>>, vector<2x4xf32>
    tpu.vector_store %arg10[%c0_23, %c0_24], %26 {strides = array<i32>} : memref<2x4xf32, #tpu.memory_space<vmem>>, vector<2x4xf32>,
    return
  }
  func.func @transform_0(%arg0: i32) -> (i32, i32) {
    %c0_i32 = arith.constant 0 : i32
    %c0_i32_0 = arith.constant 0 : i32
    return %arg0, %c0_i32 : i32, i32
  }
  func.func @transform_1(%arg0: i32) -> (i32, i32) {
    %c0_i32 = arith.constant 0 : i32
    %c0_i32_0 = arith.constant 0 : i32
    %c0_i32_1 = arith.constant 0 : i32
    return %c0_i32, %c0_i32_0 : i32, i32
  }
  func.func @transform_2(%arg0: i32) -> (i32, i32) {
    %c0_i32 = arith.constant 0 : i32
    %c0_i32_0 = arith.constant 0 : i32
    %c0_i32_1 = arith.constant 0 : i32
    return %c0_i32, %c0_i32_0 : i32, i32
  }
  func.func @transform_3(%arg0: i32) -> (i32, i32) {
    %c0_i32 = arith.constant 0 : i32
    %c0_i32_0 = arith.constant 0 : i32
    %c0_i32_1 = arith.constant 0 : i32
    return %c0_i32, %c0_i32_0 : i32, i32
  }
  func.func @transform_4(%arg0: i32) -> (i32, i32) {
    %c0_i32 = arith.constant 0 : i32
    %c0_i32_0 = arith.constant 0 : i32
    %c0_i32_1 = arith.constant 0 : i32
    return %c0_i32, %c0_i32_0 : i32, i32
  }
  func.func @transform_5(%arg0: i32) -> (i32, i32) {
    %c0_i32 = arith.constant 0 : i32
    %c0_i32_0 = arith.constant 0 : i32
    %c0_i32_1 = arith.constant 0 : i32
    return %c0_i32, %c0_i32_0 : i32, i32
  }
  func.func @transform_6(%arg0: i32) -> (i32, i32) {
    %c0_i32 = arith.constant 0 : i32
    %c0_i32_0 = arith.constant 0 : i32
    %c0_i32_1 = arith.constant 0 : i32
    return %c0_i32, %c0_i32_0 : i32, i32
  }
  func.func @transform_7(%arg0: i32) -> (i32, i32) {
    %c0_i32 = arith.constant 0 : i32
    %c0_i32_0 = arith.constant 0 : i32
    %c0_i32_1 = arith.constant 0 : i32
    return %c0_i32, %c0_i32_0 : i32, i32
  }
  func.func @transform_8(%arg0: i32) -> (i32, i32) {
    %c0_i32 = arith.constant 0 : i32
    %c0_i32_0 = arith.constant 0 : i32
    %c0_i32_1 = arith.constant 0 : i32
    return %c0_i32, %c0_i32_0 : i32, i32
  }
  func.func @transform_9(%arg0: i32) -> (i32, i32) {
    %c0_i32 = arith.constant 0 : i32
    %c0_i32_0 = arith.constant 0 : i32
    return %arg0, %c0_i32 : i32, i32
  }
}

</mosaic_0001>

<bundles_post_ra>
// kernel: lqnet_shareR_forward.1
= control target key start
LH: loop header
LB: loop body
LE: loop exit
PB: predicated region body
PF: predicated region fallthrough
CT: control target
= control target key end

     0   :  { %14 = vsyncpa [#allocation3], 0  ;;  %s2419_s0 = inlined_call_operand.vmem [shape: f32[2,400], index: 0, kind: input, shape index: {}]   ;;  %s2420_s1 = inlined_call_operand.hbm [shape: f32[400,1024], index: 1, kind: input, shape index: {}]   ;;  %s2421_s2 = inlined_call_operand.hbm [shape: f32[1,1024], index: 2, kind: input, shape index: {}]   ;;  %s2422_s3 = inlined_call_operand.hbm [shape: f32[1024,128], index: 3, kind: input, shape index: {}]   ;;  %s2423_s4 = inlined_call_operand.hbm [shape: f32[1,128], index: 4, kind: input, shape index: {}]   ;;  %s2424_s5 = inlined_call_operand.hbm [shape: f32[128,256], index: 5, kind: input, shape index: {}]   ;;  %s2425_s6 = inlined_call_operand.hbm [shape: f32[1,256], index: 6, kind: input, shape index: {}]   ;;  %s2426_s7 = inlined_call_operand.vmem [shape: f32[256,4], index: 7, kind: input, shape index: {}]   ;;  %s2427_s8 = inlined_call_operand.vmem [shape: f32[1,4], index: 8, kind: input, shape index: {}]   ;;  %s2428_s9 = inlined_call_operand.hbm [shape: f32[2,4], index: 9, kind: output, shape index: {}]  }
   0x1   :  { %15 = vsyncpa [#allocation6], 0 }
   0x2   :  { %16 = vsyncpa [#allocation9], 0 }
   0x3   :  { %17 = vsyncpa [#allocation12], 0 }
   0x4   :  { %18 = vsyncpa [#allocation4], 0  ;;  %s2161_s30 = smov [#allocation5]   ;;  %s2162_s11 = smov [#allocation8]  }
   0x5   :  { %s39_s10 = sshll.u32 %s2161_s30, 4  ;;  %s61_s12 = sshll.u32 %s2162_s11, 4  ;;  %s40_s10 = int_to_ptr.vmem [resolvable:$true] %s39_s10  ;;  %s62_s12 = int_to_ptr.vmem [resolvable:$true] %s61_s12 }
   0x6   :  { %s2019_s13 = scalar_lea.vmem %s40_s10, 128  ;;  %p2024_p1 = scmp.lt.s32.totalorder %s40_s10, %s40_s10 }
   0x7   :  { %p2020_p0 = scmp.ne.s32.totalorder %s40_s10, %s2019_s13  ;;  %p2025_p2 = scmp.lt.s32.totalorder %s2019_s13, %s2019_s13 }
   0x9   :  { %p2026_p3 = por %p2025_p2, %p2024_p1 }
   0xb   :  { %p2027_p4 = pnand %p2026_p3, %p2020_p0 }
   0xd   :  { %2030 = shalt.err (!%p2027_p4)
}
   0xe   :  { %42 = dma.hbm_to_vmem [thread:$0]  %s2421_s2, 128, %s40_s10, [#allocation6]  }
   0xf   :  { %s2039_s16 = scalar_lea.vmem %s62_s12, 16  ;;  %s2043_s17 = scalar_lea.vmem %s62_s12, 32 }
  0x10   :  { %p2040_p5 = scmp.ne.s32.totalorder %s62_s12, %s2039_s16  ;;  %p2044_p6 = scmp.lt.s32.totalorder %s62_s12, %s62_s12 }
  0x11   :  { %p2045_p7 = scmp.lt.s32.totalorder %s2043_s17, %s2039_s16 }
  0x13   :  { %p2046_p8 = por %p2045_p7, %p2044_p6 }
  0x15   :  { %p2047_p9 = pnand %p2046_p8, %p2040_p5 }
  0x17   :  { %2050 = shalt.err (!%p2047_p9)
}
  0x18   :  { %64 = dma.hbm_to_vmem [thread:$0]  %s2423_s4, 16, %s62_s12, [#allocation9]  }
  0x19   :  { %s2163_s20 = smov [#allocation2]  }
  0x1a   :  { %s26_s21 = sshll.u32 %s2163_s20, 4  ;;  %s27_s21 = int_to_ptr.vmem [resolvable:$true] %s26_s21 }
  0x1b   :  { %s2059_s22 = scalar_lea.vmem %s27_s21, 51200  ;;  %p2064_p11 = scmp.lt.s32.totalorder %s27_s21, %s27_s21 }
  0x1c   :  { %p2060_p10 = scmp.ne.s32.totalorder %s27_s21, %s2059_s22  ;;  %p2065_p12 = scmp.lt.s32.totalorder %s2059_s22, %s2059_s22 }
  0x1e   :  { %p2066_p13 = por %p2065_p12, %p2064_p11 }
  0x20   :  { %p2067_p0 = pnand %p2066_p13, %p2060_p10 }
  0x22   :  { %2070 = shalt.err (!%p2067_p0)
}
  0x23   :  { %s2164_s2 = smov 1024   ;;  %s2165_s23 = smov 64  }
  0x24   :  { %32 = dma.hbm_to_vmem [thread:$0]  %s2420_s1, 51200, %s27_s21, [#allocation3], %s2164_s2, %s2164_s2, %s2165_s23  }
  0x25   :  { %s2166_s26 = smov [#allocation7]  }
  0x26   :  { %s48_s27 = sshll.u32 %s2166_s26, 4  ;;  %s49_s27 = int_to_ptr.vmem [resolvable:$true] %s48_s27 }
  0x27   :  { %s2079_s4 = scalar_lea.vmem %s49_s27, 16384  ;;  %p2084_p2 = scmp.lt.s32.totalorder %s49_s27, %s49_s27 }
  0x28   :  { %p2080_p1 = scmp.ne.s32.totalorder %s49_s27, %s2079_s4  ;;  %p2085_p3 = scmp.lt.s32.totalorder %s2079_s4, %s2079_s4 }
  0x2a   :  { %p2086_p4 = por %p2085_p3, %p2084_p2 }
  0x2c   :  { %p2087_p5 = pnand %p2086_p4, %p2080_p1 }
  0x2e   :  { %2090 = shalt.err (!%p2087_p5)
}
  0x2f   :  { %s2167_s28 = smov 128   ;;  %s2168_s29 = smov 8  }
  0x30   :  { %54 = dma.hbm_to_vmem [thread:$0]  %s2422_s3, 16384, %s49_s27, [#allocation6], %s2167_s28, %s2167_s28, %s2168_s29  }
  0x31   :  { %s2169_s11 = smov [#allocation10]  }
  0x32   :  { %s70_s12 = sshll.u32 %s2169_s11, 4  ;;  %s71_s12 = int_to_ptr.vmem [resolvable:$true] %s70_s12 }
  0x33   :  { %s2099_s1 = scalar_lea.vmem %s71_s12, 4096  ;;  %p2104_p7 = scmp.lt.s32.totalorder %s71_s12, %s71_s12 }
  0x34   :  { %p2100_p6 = scmp.ne.s32.totalorder %s71_s12, %s2099_s1  ;;  %p2105_p8 = scmp.lt.s32.totalorder %s2099_s1, %s2099_s1 }
  0x36   :  { %p2106_p9 = por %p2105_p8, %p2104_p7 }
  0x38   :  { %p2107_p10 = pnand %p2106_p9, %p2100_p6 }
  0x3a   :  { %2110 = shalt.err (!%p2107_p10)
}
  0x3b   :  { %s2170_s13 = smov 256   ;;  %s2171_s14 = smov 16  }
  0x3c   :  { %76 = dma.hbm_to_vmem [thread:$0]  %s2424_s5, 4096, %s71_s12, [#allocation9], %s2170_s13, %s2170_s13, %s2171_s14  }
  0x3d   :  { %s2172_s17 = smov [#allocation11]  }
  0x3e   :  { %s83_s18 = sshll.u32 %s2172_s17, 4  ;;  %s84_s18 = int_to_ptr.vmem [resolvable:$true] %s83_s18 }
  0x3f   :  { %s2119_s3 = scalar_lea.vmem %s84_s18, 32  ;;  %p2124_p12 = scmp.lt.s32.totalorder %s84_s18, %s84_s18 }
  0x40   :  { %p2120_p11 = scmp.ne.s32.totalorder %s84_s18, %s2119_s3  ;;  %p2125_p13 = scmp.lt.s32.totalorder %s2119_s3, %s2119_s3 }
  0x42   :  { %p2126_p0 = por %p2125_p13, %p2124_p12 }
  0x44   :  { %p2127_p1 = pnand %p2126_p0, %p2120_p11 }
  0x46   :  { %2130 = shalt.err (!%p2127_p1)
}
  0x47   :  { %86 = dma.hbm_to_vmem [thread:$0]  %s2425_s6, 32, %s84_s18, [#allocation12]  }
  0x48   :  { %2151 = dma.done.wait [#allocation3], 51200  }
  0x49   :  { %2152 = vsyncadd [#allocation3], 4294916096 }
  0x4a   :  { %2153 = dma.done.wait [#allocation6], 16512  }
  0x4b   :  { %2154 = vsyncadd [#allocation6], 4294950784 }
  0x4c   :  { %2155 = dma.done.wait [#allocation9], 4112  }
  0x4d   :  { %2156 = vsyncadd [#allocation9], 4294963184 }
  0x4e   :  { %2157 = dma.done.wait [#allocation12], 32  }
  0x4f   :  { %2158 = vsyncadd [#allocation12], 4294967264  ;;  %v231_v0 = vld [vmem:[#allocation2 + $0x3c8] sm:$0xff]  ;;  %v230_v2 = vld [vmem:[#allocation2 + $0x3c0] sm:$0xff]  ;;  %v512_v40 = vlaneseq  ;;  %v2173_v41 = vmov 1983009808  }
  0x50   :  { %v487_v1 = vld [vmem:[#allocation2 + $0xbc8] sm:$0xff]  ;;  %576 = vmatprep.subr.mxu0 %v231_v0  ;;  %v486_v3 = vld [vmem:[#allocation2 + $0xbc0] sm:$0xff]  ;;  %v555_v42 = vunpack.c.l.s4 %v2173_v41  ;;  %vm573_vm0 = vcmask 130048   ;;  %v192_v41 = vld [vmem:[#allocation2 + $0x290] sm:$0xff]  ;;  %s2175_s4 = smov [#allocation13]   ;;  %vm1794_vm1 = vcmask 25600  }
  0x51   :  { %647 = vmatprep.subr.mxu1 %v487_v1  ;;  %v223_v4 = vld [vmem:[#allocation2 + $0x388] sm:$0xff]  ;;  %577 = vmatpush1.msra.mxu0 %v230_v2  ;;  %v222_v6 = vld [vmem:[#allocation2 + $0x380] sm:$0xff]  ;;  %v2244_v51 = vshrl.u32 %v512_v40, 7  ;;  %s1802_s28 = sshll.u32 %s2175_s4, 4  ;;  %s1803_s28 = int_to_ptr.vmem [resolvable:$true] %s1802_s28 }
  0x52   :  { %v479_v5 = vld [vmem:[#allocation2 + $0xb88] sm:$0xff]  ;;  %648 = vmatpush1.msra.mxu1 %v486_v3  ;;  %v478_v7 = vld [vmem:[#allocation2 + $0xb80] sm:$0xff]  ;;  %578 = vmatprep.subr.mxu0 %v223_v4  ;;  %v556_v52 = vunpack.c.0.s8 %v555_v42  ;;  %s2131_s29 = scalar_lea.vmem %s1803_s28, 32  ;;  %p2136_p3 = scmp.lt.s32.totalorder %s1803_s28, %s1803_s28 }
  0x53   :  { %v215_v8 = vld [vmem:[#allocation2 + $0x348] sm:$0xff]  ;;  %649 = vmatprep.subr.mxu1 %v479_v5  ;;  %v214_v10 = vld [vmem:[#allocation2 + $0x340] sm:$0xff]  ;;  %579 = vmatpush1.msra.mxu0 %v222_v6  ;;  %p2132_p2 = scmp.ne.s32.totalorder %s1803_s28, %s2131_s29  ;;  %p2137_p4 = scmp.lt.s32.totalorder %s2131_s29, %s2131_s29 }
  0x54   :  { %v471_v9 = vld [vmem:[#allocation2 + $0xb48] sm:$0xff]  ;;  %v470_v11 = vld [vmem:[#allocation2 + $0xb40] sm:$0xff]  ;;  %650 = vmatpush1.msra.mxu1 %v478_v7  ;;  %580 = vmatprep.subr.mxu0 %v215_v8  ;;  %v2254_v63 = vsub.s32 %v556_v52, %v2244_v51  ;;  %v169_v52 = vld [vmem:[#allocation2 + $0x1d8] sm:$0xff] }
  0x55   :  { %v207_v12 = vld [vmem:[#allocation2 + $0x308] sm:$0xff]  ;;  %651 = vmatprep.subr.mxu1 %v471_v9  ;;  %v206_v14 = vld [vmem:[#allocation2 + $0x300] sm:$0xff]  ;;  %581 = vmatpush1.msra.mxu0 %v214_v10  ;;  %p2138_p5 = por %p2137_p4, %p2136_p3 }
  0x56   :  { %v463_v13 = vld [vmem:[#allocation2 + $0xb08] sm:$0xff]  ;;  %v462_v15 = vld [vmem:[#allocation2 + $0xb00] sm:$0xff]  ;;  %652 = vmatpush1.msra.mxu1 %v470_v11  ;;  %582 = vmatprep.subr.mxu0 %v207_v12 }
  0x57   :  { %v199_v16 = vld [vmem:[#allocation2 + $0x2c8] sm:$0xff]  ;;  %653 = vmatprep.subr.mxu1 %v463_v13  ;;  %v198_v18 = vld [vmem:[#allocation2 + $0x2c0] sm:$0xff]  ;;  %583 = vmatpush1.msra.mxu0 %v206_v14  ;;  %p2139_p6 = pnand %p2138_p5, %p2132_p2 }
  0x58   :  { %v455_v17 = vld [vmem:[#allocation2 + $0xac8] sm:$0xff]  ;;  %v454_v19 = vld [vmem:[#allocation2 + $0xac0] sm:$0xff]  ;;  %654 = vmatpush1.msra.mxu1 %v462_v15  ;;  %584 = vmatprep.subr.mxu0 %v199_v16 }
  0x59   :  { %v191_v20 = vld [vmem:[#allocation2 + $0x288] sm:$0xff]  ;;  %655 = vmatprep.subr.mxu1 %v455_v17  ;;  %v190_v22 = vld [vmem:[#allocation2 + $0x280] sm:$0xff]  ;;  %585 = vmatpush1.msra.mxu0 %v198_v18 }
  0x5a   :  { %v447_v21 = vld [vmem:[#allocation2 + $0xa88] sm:$0xff]  ;;  %v446_v23 = vld [vmem:[#allocation2 + $0xa80] sm:$0xff]  ;;  %656 = vmatpush1.msra.mxu1 %v454_v19  ;;  %586 = vmatprep.subr.mxu0 %v191_v20  ;;  %v233_v19 = vld [vmem:[#allocation2 + $0x3d8] sm:$0xff] }
  0x5b   :  { %v183_v24 = vld [vmem:[#allocation2 + $0x248] sm:$0xff]  ;;  %657 = vmatprep.subr.mxu1 %v447_v21  ;;  %v182_v26 = vld [vmem:[#allocation2 + $0x240] sm:$0xff]  ;;  %587 = vmatpush1.msra.mxu0 %v190_v22  ;;  %v232_v21 = vld [vmem:[#allocation2 + $0x3d0] sm:$0xff] }
  0x5c   :  { %v439_v25 = vld [vmem:[#allocation2 + $0xa48] sm:$0xff]  ;;  %v438_v27 = vld [vmem:[#allocation2 + $0xa40] sm:$0xff]  ;;  %658 = vmatpush1.msra.mxu1 %v446_v23  ;;  %588 = vmatprep.subr.mxu0 %v183_v24  ;;  %v225_v23 = vld [vmem:[#allocation2 + $0x398] sm:$0xff] }
  0x5d   :  { %v175_v28 = vld [vmem:[#allocation2 + $0x208] sm:$0xff]  ;;  %659 = vmatprep.subr.mxu1 %v439_v25  ;;  %v174_v30 = vld [vmem:[#allocation2 + $0x200] sm:$0xff]  ;;  %589 = vmatpush1.msra.mxu0 %v182_v26  ;;  %v224_v25 = vld [vmem:[#allocation2 + $0x390] sm:$0xff] }
  0x5e   :  { %v431_v29 = vld [vmem:[#allocation2 + $0xa08] sm:$0xff]  ;;  %v430_v31 = vld [vmem:[#allocation2 + $0xa00] sm:$0xff]  ;;  %660 = vmatpush1.msra.mxu1 %v438_v27  ;;  %590 = vmatprep.subr.mxu0 %v175_v28  ;;  %v217_v27 = vld [vmem:[#allocation2 + $0x358] sm:$0xff] }
  0x5f   :  { %v167_v32 = vld [vmem:[#allocation2 + $0x1c8] sm:$0xff]  ;;  %661 = vmatprep.subr.mxu1 %v431_v29  ;;  %v166_v34 = vld [vmem:[#allocation2 + $0x1c0] sm:$0xff]  ;;  %591 = vmatpush1.msra.mxu0 %v174_v30  ;;  %v216_v29 = vld [vmem:[#allocation2 + $0x350] sm:$0xff] }
  0x60   :  { %v423_v33 = vld [vmem:[#allocation2 + $0x9c8] sm:$0xff]  ;;  %v422_v35 = vld [vmem:[#allocation2 + $0x9c0] sm:$0xff]  ;;  %662 = vmatpush1.msra.mxu1 %v430_v31  ;;  %592 = vmatprep.subr.mxu0 %v167_v32  ;;  %v209_v31 = vld [vmem:[#allocation2 + $0x318] sm:$0xff] }
  0x61   :  { %v159_v36 = vld [vmem:[#allocation2 + $0x188] sm:$0xff]  ;;  %663 = vmatprep.subr.mxu1 %v423_v33  ;;  %v158_v38 = vld [vmem:[#allocation2 + $0x180] sm:$0xff]  ;;  %593 = vmatpush1.msra.mxu0 %v166_v34  ;;  %v208_v33 = vld [vmem:[#allocation2 + $0x310] sm:$0xff] }
  0x62   :  { %v415_v37 = vld [vmem:[#allocation2 + $0x988] sm:$0xff]  ;;  %v414_v39 = vld [vmem:[#allocation2 + $0x980] sm:$0xff]  ;;  %664 = vmatpush1.msra.mxu1 %v422_v35  ;;  %594 = vmatprep.subr.mxu0 %v159_v36  ;;  %v201_v35 = vld [vmem:[#allocation2 + $0x2d8] sm:$0xff] }
  0x63   :  { %v151_v43 = vld [vmem:[#allocation2 + $0x148] sm:$0xff]  ;;  %665 = vmatprep.subr.mxu1 %v415_v37  ;;  %v150_v45 = vld [vmem:[#allocation2 + $0x140] sm:$0xff]  ;;  %595 = vmatpush1.msra.mxu0 %v158_v38  ;;  %v200_v37 = vld [vmem:[#allocation2 + $0x2d0] sm:$0xff] }
  0x64   :  { %v407_v44 = vld [vmem:[#allocation2 + $0x948] sm:$0xff]  ;;  %v406_v46 = vld [vmem:[#allocation2 + $0x940] sm:$0xff]  ;;  %666 = vmatpush1.msra.mxu1 %v414_v39  ;;  %596 = vmatprep.subr.mxu0 %v151_v43  ;;  %v193_v39 = vld [vmem:[#allocation2 + $0x298] sm:$0xff] }
  0x65   :  { %v143_v47 = vld [vmem:[#allocation2 + $0x108] sm:$0xff]  ;;  %667 = vmatprep.subr.mxu1 %v407_v44  ;;  %v142_v49 = vld [vmem:[#allocation2 + $0x100] sm:$0xff]  ;;  %597 = vmatpush1.msra.mxu0 %v150_v45  ;;  %v185_v43 = vld [vmem:[#allocation2 + $0x258] sm:$0xff] }
  0x66   :  { %v399_v48 = vld [vmem:[#allocation2 + $0x908] sm:$0xff]  ;;  %v398_v50 = vld [vmem:[#allocation2 + $0x900] sm:$0xff]  ;;  %668 = vmatpush1.msra.mxu1 %v406_v46  ;;  %598 = vmatprep.subr.mxu0 %v143_v47  ;;  %v184_v45 = vld [vmem:[#allocation2 + $0x250] sm:$0xff] }
  0x67   :  { %v135_v53 = vld [vmem:[#allocation2 + $0xc8] sm:$0xff]  ;;  %669 = vmatprep.subr.mxu1 %v399_v48  ;;  %v134_v55 = vld [vmem:[#allocation2 + $0xc0] sm:$0xff]  ;;  %599 = vmatpush1.msra.mxu0 %v142_v49  ;;  %v177_v47 = vld [vmem:[#allocation2 + $0x218] sm:$0xff] }
  0x68   :  { %v391_v54 = vld [vmem:[#allocation2 + $0x8c8] sm:$0xff]  ;;  %v390_v56 = vld [vmem:[#allocation2 + $0x8c0] sm:$0xff]  ;;  %670 = vmatpush1.msra.mxu1 %v398_v50  ;;  %600 = vmatprep.subr.mxu0 %v135_v53  ;;  %v176_v49 = vld [vmem:[#allocation2 + $0x210] sm:$0xff] }
  0x69   :  { %v127_v57 = vld [vmem:[#allocation2 + $0x88] sm:$0xff]  ;;  %v2249_v59 = vld [vmem:[%s2419_s0] sm:$0xff]  ;;  %671 = vmatprep.subr.mxu1 %v391_v54  ;;  %601 = vmatpush1.msra.mxu0 %v134_v55  ;;  %v168_v54 = vld [vmem:[#allocation2 + $0x1d0] sm:$0xff] }
  0x6a   :  { %v383_v58 = vld [vmem:[#allocation2 + $0x888] sm:$0xff]  ;;  %v126_v60 = vld [vmem:[#allocation2 + $0x80] sm:$0xff]  ;;  %v553_v62 = vcombine.high %v2249_v59, %v2249_v59  ;;  %672 = vmatpush1.msra.mxu1 %v390_v56  ;;  %602 = vmatprep.subr.mxu0 %v127_v57  ;;  %v161_v56 = vld [vmem:[#allocation2 + $0x198] sm:$0xff] }
  0x6b   :  { %v382_v61 = vld [vmem:[#allocation2 + $0x880] sm:$0xff]  ;;  %v119_v0 = vld [vmem:[#allocation2 + $0x48] sm:$0xff]  ;;  %673 = vmatprep.subr.mxu1 %v383_v58  ;;  %603 = vmatpush1.msra.mxu0 %v126_v60  ;;  %v160_v58 = vld [vmem:[#allocation2 + $0x190] sm:$0xff] }
  0x6c   :  { %v375_v1 = vld [vmem:[#allocation2 + $0x848] sm:$0xff]  ;;  %v118_v2 = vld [vmem:[#allocation2 + $0x40] sm:$0xff]  ;;  %674 = vmatpush1.msra.mxu1 %v382_v61  ;;  %604 = vmatprep.subr.mxu0 %v119_v0  ;;  %v2257_v8 = vrot.slane %v553_v62, %v2254_v63  ;;  %v153_v61 = vld [vmem:[#allocation2 + $0x158] sm:$0xff] }
  0x6d   :  { %v374_v3 = vld [vmem:[#allocation2 + $0x840] sm:$0xff]  ;;  %v111_v4 = vld [vmem:[#allocation2 + $0x8] sm:$0xff]  ;;  %675 = vmatprep.subr.mxu1 %v375_v1  ;;  %605 = vmatpush1.msra.mxu0 %v118_v2  ;;  %v152_v0 = vld [vmem:[#allocation2 + $0x150] sm:$0xff] }
  0x6e   :  { %v367_v5 = vld [vmem:[#allocation2 + $0x808] sm:$0xff]  ;;  %v110_v6 = vld [vmem:[#allocation2] sm:$0xff]  ;;  %676 = vmatpush1.msra.mxu1 %v374_v3  ;;  %606 = vmatprep.subr.mxu0 %v111_v4  ;;  %v2261_v17 = vcombine.high %v2257_v8, %v2257_v8  ;;  %v145_v2 = vld [vmem:[#allocation2 + $0x118] sm:$0xff]  ;;  %v2268_v3 = vrot.slane %v2249_v59, %v2254_v63 }
  0x6f   :  { %v366_v7 = vld [vmem:[#allocation2 + $0x800] sm:$0xff]  ;;  %v359_v9 = vld [vmem:[#allocation2 + $0x7c8] sm:$0xff]  ;;  %677 = vmatprep.subr.mxu1 %v367_v5  ;;  %607 = vmatpush1.msra.mxu0 %v110_v6  ;;  %v144_v5 = vld [vmem:[#allocation2 + $0x110] sm:$0xff] }
  0x70   :  { %v503_v10 = vld [vmem:[#allocation2 + $0xc48] sm:$0xff]  ;;  %v358_v11 = vld [vmem:[#allocation2 + $0x7c0] sm:$0xff]  ;;  %678 = vmatpush1.msra.mxu1 %v366_v7  ;;  %608 = vmatprep.subr.mxu0 %v359_v9  ;;  %v137_v7 = vld [vmem:[#allocation2 + $0xd8] sm:$0xff]  ;;  %v2272_v59 = vcombine.high %v2268_v3, %v2268_v3 }
  0x71   :  { %v502_v12 = vld [vmem:[#allocation2 + $0xc40] sm:$0xff]  ;;  %v351_v13 = vld [vmem:[#allocation2 + $0x788] sm:$0xff]  ;;  %707 = vmatprep.subr.mxu1 %v503_v10  ;;  %609 = vmatpush2.msra.mxu0 %v358_v11  ;;  %v136_v10 = vld [vmem:[#allocation2 + $0xd0] sm:$0xff] }
  0x72   :  { %v495_v14 = vld [vmem:[#allocation2 + $0xc08] sm:$0xff]  ;;  %v350_v15 = vld [vmem:[#allocation2 + $0x780] sm:$0xff]  ;;  %708 = vmatpush2.msra.mxu1 %v502_v12  ;;  %610 = vmatprep.subr.mxu0 %v351_v13  ;;  %v129_v12 = vld [vmem:[#allocation2 + $0x98] sm:$0xff] }
  0x73   :  { %v494_v16 = vld [vmem:[#allocation2 + $0xc00] sm:$0xff]  ;;  %v343_v18 = vld [vmem:[#allocation2 + $0x748] sm:$0xff]  ;;  %709 = vmatprep.subr.mxu1 %v495_v14  ;;  %611 = vmatpush2.msra.mxu0 %v350_v15  ;;  %v128_v13 = vld [vmem:[#allocation2 + $0x90] sm:$0xff] }
  0x74   :  { %710 = vmatpush2.msra.mxu1 %v494_v16  ;;  %v342_v20 = vld [vmem:[#allocation2 + $0x740] sm:$0xff]  ;;  %1814 = vmatprep.mubr.msk.f32.mxu1 %vm573_vm0, %v2261_v17  ;;  %v335_v22 = vld [vmem:[#allocation2 + $0x708] sm:$0xff]  ;;  %v121_v14 = vld [vmem:[#allocation2 + $0x58] sm:$0xff] }
  0x75   :  { %612 = vmatprep.subr.mxu0 %v343_v18  ;;  %712 = vmatmul.mubr.f32.vlgmr.msra.gmra.mxu1 %v2257_v8  ;;  %v334_v24 = vld [vmem:[#allocation2 + $0x700] sm:$0xff]  ;;  %v327_v26 = vld [vmem:[#allocation2 + $0x6c8] sm:$0xff]  ;;  %v489_v15 = vld [vmem:[#allocation2 + $0xbd8] sm:$0xff] }
  0x76   :  { %718 = vmatprep.subr.mxu1 %v233_v19  ;;  %613 = vmatpush2.msra.mxu0 %v342_v20  ;;  %v326_v28 = vld [vmem:[#allocation2 + $0x6c0] sm:$0xff]  ;;  %v319_v30 = vld [vmem:[#allocation2 + $0x688] sm:$0xff]  ;;  %v120_v16 = vld [vmem:[#allocation2 + $0x50] sm:$0xff] }
  0x77   :  { %719 = vmatpush1.msra.mxu1 %v232_v21  ;;  %614 = vmatprep.subr.mxu0 %v335_v22  ;;  %v318_v32 = vld [vmem:[#allocation2 + $0x680] sm:$0xff]  ;;  %v311_v34 = vld [vmem:[#allocation2 + $0x648] sm:$0xff]  ;;  %v488_v18 = vld [vmem:[#allocation2 + $0xbd0] sm:$0xff] }
  0x78   :  { %720 = vmatprep.subr.mxu1 %v225_v23  ;;  %615 = vmatpush2.msra.mxu0 %v334_v24  ;;  %v310_v36 = vld [vmem:[#allocation2 + $0x640] sm:$0xff]  ;;  %v303_v38 = vld [vmem:[#allocation2 + $0x608] sm:$0xff]  ;;  %v113_v19 = vld [vmem:[#allocation2 + $0x18] sm:$0xff] }
  0x79   :  { %721 = vmatpush1.msra.mxu1 %v224_v25  ;;  %616 = vmatprep.subr.mxu0 %v327_v26  ;;  %v302_v40 = vld [vmem:[#allocation2 + $0x600] sm:$0xff]  ;;  %v295_v42 = vld [vmem:[#allocation2 + $0x5c8] sm:$0xff]  ;;  %v481_v20 = vld [vmem:[#allocation2 + $0xb98] sm:$0xff] }
  0x7a   :  { %722 = vmatprep.subr.mxu1 %v217_v27  ;;  %617 = vmatpush2.msra.mxu0 %v326_v28  ;;  %v294_v44 = vld [vmem:[#allocation2 + $0x5c0] sm:$0xff]  ;;  %v287_v46 = vld [vmem:[#allocation2 + $0x588] sm:$0xff]  ;;  %v112_v21 = vld [vmem:[#allocation2 + $0x10] sm:$0xff] }
  0x7b   :  { %723 = vmatpush1.msra.mxu1 %v216_v29  ;;  %618 = vmatprep.subr.mxu0 %v319_v30  ;;  %v286_v48 = vld [vmem:[#allocation2 + $0x580] sm:$0xff]  ;;  %v279_v50 = vld [vmem:[#allocation2 + $0x548] sm:$0xff]  ;;  %v480_v22 = vld [vmem:[#allocation2 + $0xb90] sm:$0xff] }
  0x7c   :  { %724 = vmatprep.subr.mxu1 %v209_v31  ;;  %619 = vmatpush2.msra.mxu0 %v318_v32  ;;  %v278_v53 = vld [vmem:[#allocation2 + $0x540] sm:$0xff]  ;;  %v271_v55 = vld [vmem:[#allocation2 + $0x508] sm:$0xff]  ;;  %v361_v23 = vld [vmem:[#allocation2 + $0x7d8] sm:$0xff] }
  0x7d   :  { %725 = vmatpush1.msra.mxu1 %v208_v33  ;;  %620 = vmatprep.subr.mxu0 %v311_v34  ;;  %v270_v57 = vld [vmem:[#allocation2 + $0x500] sm:$0xff]  ;;  %v263_v60 = vld [vmem:[#allocation2 + $0x4c8] sm:$0xff]  ;;  %v473_v24 = vld [vmem:[#allocation2 + $0xb58] sm:$0xff] }
  0x7e   :  { %726 = vmatprep.subr.mxu1 %v201_v35  ;;  %621 = vmatpush2.msra.mxu0 %v310_v36  ;;  %v262_v62 = vld [vmem:[#allocation2 + $0x4c0] sm:$0xff]  ;;  %v255_v1 = vld [vmem:[#allocation2 + $0x488] sm:$0xff]  ;;  %v360_v25 = vld [vmem:[#allocation2 + $0x7d0] sm:$0xff] }
  0x7f   :  { %727 = vmatpush1.msra.mxu1 %v200_v37  ;;  %622 = vmatprep.subr.mxu0 %v303_v38  ;;  %v254_v4 = vld [vmem:[#allocation2 + $0x480] sm:$0xff]  ;;  %v247_v6 = vld [vmem:[#allocation2 + $0x448] sm:$0xff]  ;;  %v472_v26 = vld [vmem:[#allocation2 + $0xb50] sm:$0xff] }
  0x80   :  { %728 = vmatprep.subr.mxu1 %v193_v39  ;;  %623 = vmatpush2.msra.mxu0 %v302_v40  ;;  %v246_v9 = vld [vmem:[#allocation2 + $0x440] sm:$0xff]  ;;  %v239_v11 = vld [vmem:[#allocation2 + $0x408] sm:$0xff]  ;;  %v353_v27 = vld [vmem:[#allocation2 + $0x798] sm:$0xff] }
  0x81   :  { %729 = vmatpush1.msra.mxu1 %v192_v41  ;;  %624 = vmatprep.subr.mxu0 %v295_v42  ;;  %v238_v63 = vld [vmem:[#allocation2 + $0x400] sm:$0xff]  ;;  %v465_v28 = vld [vmem:[#allocation2 + $0xb18] sm:$0xff]  ;;  %v352_v29 = vld [vmem:[#allocation2 + $0x790] sm:$0xff] }
  0x82   :  { %730 = vmatprep.subr.mxu1 %v185_v43  ;;  %625 = vmatpush2.msra.mxu0 %v294_v44  ;;  %v464_v30 = vld [vmem:[#allocation2 + $0xb10] sm:$0xff]  ;;  %v345_v31 = vld [vmem:[#allocation2 + $0x758] sm:$0xff] }
  0x83   :  { %731 = vmatpush1.msra.mxu1 %v184_v45  ;;  %626 = vmatprep.subr.mxu0 %v287_v46  ;;  %v457_v32 = vld [vmem:[#allocation2 + $0xad8] sm:$0xff]  ;;  %v344_v33 = vld [vmem:[#allocation2 + $0x750] sm:$0xff] }
  0x84   :  { %732 = vmatprep.subr.mxu1 %v177_v47  ;;  %627 = vmatpush2.msra.mxu0 %v286_v48  ;;  %v456_v34 = vld [vmem:[#allocation2 + $0xad0] sm:$0xff]  ;;  %v337_v35 = vld [vmem:[#allocation2 + $0x718] sm:$0xff] }
  0x85   :  { %733 = vmatpush1.msra.mxu1 %v176_v49  ;;  %628 = vmatprep.subr.mxu0 %v279_v50  ;;  %v449_v36 = vld [vmem:[#allocation2 + $0xa98] sm:$0xff]  ;;  %v336_v37 = vld [vmem:[#allocation2 + $0x710] sm:$0xff] }
  0x86   :  { %734 = vmatprep.subr.mxu1 %v169_v52  ;;  %629 = vmatpush2.msra.mxu0 %v278_v53  ;;  %v448_v38 = vld [vmem:[#allocation2 + $0xa90] sm:$0xff]  ;;  %v329_v39 = vld [vmem:[#allocation2 + $0x6d8] sm:$0xff] }
  0x87   :  { %735 = vmatpush1.msra.mxu1 %v168_v54  ;;  %630 = vmatprep.subr.mxu0 %v271_v55  ;;  %v441_v40 = vld [vmem:[#allocation2 + $0xa58] sm:$0xff]  ;;  %v328_v41 = vld [vmem:[#allocation2 + $0x6d0] sm:$0xff] }
  0x88   :  { %736 = vmatprep.subr.mxu1 %v161_v56  ;;  %631 = vmatpush2.msra.mxu0 %v270_v57  ;;  %v440_v42 = vld [vmem:[#allocation2 + $0xa50] sm:$0xff]  ;;  %v321_v43 = vld [vmem:[#allocation2 + $0x698] sm:$0xff] }
  0x89   :  { %737 = vmatpush1.msra.mxu1 %v160_v58  ;;  %632 = vmatprep.subr.mxu0 %v263_v60  ;;  %v433_v44 = vld [vmem:[#allocation2 + $0xa18] sm:$0xff]  ;;  %v320_v45 = vld [vmem:[#allocation2 + $0x690] sm:$0xff] }
  0x8a   :  { %738 = vmatprep.subr.mxu1 %v153_v61  ;;  %633 = vmatpush2.msra.mxu0 %v262_v62  ;;  %v432_v46 = vld [vmem:[#allocation2 + $0xa10] sm:$0xff]  ;;  %v313_v47 = vld [vmem:[#allocation2 + $0x658] sm:$0xff] }
  0x8b   :  { %739 = vmatpush1.msra.mxu1 %v152_v0  ;;  %634 = vmatprep.subr.mxu0 %v255_v1  ;;  %v425_v48 = vld [vmem:[#allocation2 + $0x9d8] sm:$0xff]  ;;  %v312_v49 = vld [vmem:[#allocation2 + $0x650] sm:$0xff] }
  0x8c   :  { %740 = vmatprep.subr.mxu1 %v145_v2  ;;  %635 = vmatpush2.msra.mxu0 %v254_v4  ;;  %v424_v50 = vld [vmem:[#allocation2 + $0x9d0] sm:$0xff]  ;;  %v305_v52 = vld [vmem:[#allocation2 + $0x618] sm:$0xff] }
  0x8d   :  { %741 = vmatpush1.msra.mxu1 %v144_v5  ;;  %636 = vmatprep.subr.mxu0 %v247_v6  ;;  %v417_v53 = vld [vmem:[#allocation2 + $0x998] sm:$0xff]  ;;  %v304_v54 = vld [vmem:[#allocation2 + $0x610] sm:$0xff] }
  0x8e   :  { %742 = vmatprep.subr.mxu1 %v137_v7  ;;  %637 = vmatpush2.msra.mxu0 %v246_v9  ;;  %v416_v55 = vld [vmem:[#allocation2 + $0x990] sm:$0xff]  ;;  %v297_v56 = vld [vmem:[#allocation2 + $0x5d8] sm:$0xff] }
  0x8f   :  { %743 = vmatpush1.msra.mxu1 %v136_v10  ;;  %638 = vmatprep.subr.mxu0 %v239_v11  ;;  %v409_v57 = vld [vmem:[#allocation2 + $0x958] sm:$0xff]  ;;  %v296_v58 = vld [vmem:[#allocation2 + $0x5d0] sm:$0xff] }
  0x90   :  { %744 = vmatprep.subr.mxu1 %v129_v12  ;;  %639 = vmatpush2.msra.mxu0 %v238_v63  ;;  %v408_v60 = vld [vmem:[#allocation2 + $0x950] sm:$0xff]  ;;  %v289_v61 = vld [vmem:[#allocation2 + $0x598] sm:$0xff] }
  0x91   :  { %640 = vmatprep.mubr.f32.mxu0 %v2272_v59  ;;  %745 = vmatpush1.msra.mxu1 %v128_v13  ;;  %v401_v62 = vld [vmem:[#allocation2 + $0x918] sm:$0xff]  ;;  %v288_v0 = vld [vmem:[#allocation2 + $0x590] sm:$0xff] }
  0x92   :  { %641 = vmatmul.mubr.f32.vlgmr.msra.gmra.mxu0 %v2268_v3  ;;  %746 = vmatprep.subr.mxu1 %v121_v14  ;;  %v400_v1 = vld [vmem:[#allocation2 + $0x910] sm:$0xff]  ;;  %v281_v2 = vld [vmem:[#allocation2 + $0x558] sm:$0xff] }
  0x93   :  { %789 = vmatprep.subr.mxu0 %v489_v15  ;;  %747 = vmatpush1.msra.mxu1 %v120_v16  ;;  %v393_v4 = vld [vmem:[#allocation2 + $0x8d8] sm:$0xff]  ;;  %v280_v5 = vld [vmem:[#allocation2 + $0x550] sm:$0xff] }
  0x94   :  { %790 = vmatpush1.msra.mxu0 %v488_v18  ;;  %748 = vmatprep.subr.mxu1 %v113_v19  ;;  %v392_v6 = vld [vmem:[#allocation2 + $0x8d0] sm:$0xff]  ;;  %v273_v7 = vld [vmem:[#allocation2 + $0x518] sm:$0xff] }
  0x95   :  { %791 = vmatprep.subr.mxu0 %v481_v20  ;;  %749 = vmatpush1.msra.mxu1 %v112_v21  ;;  %v385_v9 = vld [vmem:[#allocation2 + $0x898] sm:$0xff]  ;;  %v272_v10 = vld [vmem:[#allocation2 + $0x510] sm:$0xff] }
  0x96   :  { %792 = vmatpush1.msra.mxu0 %v480_v22  ;;  %750 = vmatprep.subr.mxu1 %v361_v23  ;;  %v384_v11 = vld [vmem:[#allocation2 + $0x890] sm:$0xff]  ;;  %v265_v12 = vld [vmem:[#allocation2 + $0x4d8] sm:$0xff] }
  0x97   :  { %793 = vmatprep.subr.mxu0 %v473_v24  ;;  %751 = vmatpush2.msra.mxu1 %v360_v25  ;;  %v377_v63 = vld [vmem:[#allocation2 + $0x858] sm:$0xff]  ;;  %v264_v13 = vld [vmem:[#allocation2 + $0x4d0] sm:$0xff] }
  0x98   :  { %794 = vmatpush1.msra.mxu0 %v472_v26  ;;  %752 = vmatprep.subr.mxu1 %v353_v27  ;;  %v376_v14 = vld [vmem:[#allocation2 + $0x850] sm:$0xff]  ;;  %v257_v15 = vld [vmem:[#allocation2 + $0x498] sm:$0xff] }
  0x99   :  { %795 = vmatprep.subr.mxu0 %v465_v28  ;;  %753 = vmatpush2.msra.mxu1 %v352_v29  ;;  %v369_v16 = vld [vmem:[#allocation2 + $0x818] sm:$0xff]  ;;  %v256_v18 = vld [vmem:[#allocation2 + $0x490] sm:$0xff]  ;;  %v235_v28 = vld [vmem:[#allocation2 + $0x3e8] sm:$0xff] }
  0x9a   :  { %796 = vmatpush1.msra.mxu0 %v464_v30  ;;  %754 = vmatprep.subr.mxu1 %v345_v31  ;;  %v368_v19 = vld [vmem:[#allocation2 + $0x810] sm:$0xff]  ;;  %v249_v20 = vld [vmem:[#allocation2 + $0x458] sm:$0xff]  ;;  %v491_v29 = vld [vmem:[#allocation2 + $0xbe8] sm:$0xff] }
  0x9b   :  { %797 = vmatprep.subr.mxu0 %v457_v32  ;;  %755 = vmatpush2.msra.mxu1 %v344_v33  ;;  %v505_v21 = vld [vmem:[#allocation2 + $0xc58] sm:$0xff]  ;;  %v248_v22 = vld [vmem:[#allocation2 + $0x450] sm:$0xff]  ;;  %v234_v30 = vld [vmem:[#allocation2 + $0x3e0] sm:$0xff] }
  0x9c   :  { %798 = vmatpush1.msra.mxu0 %v456_v34  ;;  %756 = vmatprep.subr.mxu1 %v337_v35  ;;  %v504_v23 = vld [vmem:[#allocation2 + $0xc50] sm:$0xff]  ;;  %v241_v24 = vld [vmem:[#allocation2 + $0x418] sm:$0xff]  ;;  %v490_v31 = vld [vmem:[#allocation2 + $0xbe0] sm:$0xff] }
  0x9d   :  { %799 = vmatprep.subr.mxu0 %v449_v36  ;;  %757 = vmatpush2.msra.mxu1 %v336_v37  ;;  %v497_v25 = vld [vmem:[#allocation2 + $0xc18] sm:$0xff]  ;;  %v240_v26 = vld [vmem:[#allocation2 + $0x410] sm:$0xff]  ;;  %v227_v32 = vld [vmem:[#allocation2 + $0x3a8] sm:$0xff] }
  0x9e   :  { %800 = vmatpush1.msra.mxu0 %v448_v38  ;;  %758 = vmatprep.subr.mxu1 %v329_v39  ;;  %v496_v27 = vld [vmem:[#allocation2 + $0xc10] sm:$0xff]  ;;  %v483_v33 = vld [vmem:[#allocation2 + $0xba8] sm:$0xff]  ;;  %v226_v34 = vld [vmem:[#allocation2 + $0x3a0] sm:$0xff] }
  0x9f   :  { %801 = vmatprep.subr.mxu0 %v441_v40  ;;  %759 = vmatpush2.msra.mxu1 %v328_v41  ;;  %v482_v35 = vld [vmem:[#allocation2 + $0xba0] sm:$0xff]  ;;  %v219_v36 = vld [vmem:[#allocation2 + $0x368] sm:$0xff] }
  0xa0   :  { %802 = vmatpush1.msra.mxu0 %v440_v42  ;;  %760 = vmatprep.subr.mxu1 %v321_v43  ;;  %v475_v37 = vld [vmem:[#allocation2 + $0xb68] sm:$0xff]  ;;  %v218_v38 = vld [vmem:[#allocation2 + $0x360] sm:$0xff] }
  0xa1   :  { %803 = vmatprep.subr.mxu0 %v433_v44  ;;  %761 = vmatpush2.msra.mxu1 %v320_v45  ;;  %v474_v39 = vld [vmem:[#allocation2 + $0xb60] sm:$0xff]  ;;  %v211_v40 = vld [vmem:[#allocation2 + $0x328] sm:$0xff] }
  0xa2   :  { %804 = vmatpush1.msra.mxu0 %v432_v46  ;;  %762 = vmatprep.subr.mxu1 %v313_v47  ;;  %v467_v41 = vld [vmem:[#allocation2 + $0xb28] sm:$0xff]  ;;  %v210_v42 = vld [vmem:[#allocation2 + $0x320] sm:$0xff] }
  0xa3   :  { %805 = vmatprep.subr.mxu0 %v425_v48  ;;  %763 = vmatpush2.msra.mxu1 %v312_v49  ;;  %v466_v43 = vld [vmem:[#allocation2 + $0xb20] sm:$0xff]  ;;  %v203_v44 = vld [vmem:[#allocation2 + $0x2e8] sm:$0xff] }
  0xa4   :  { %806 = vmatpush1.msra.mxu0 %v424_v50  ;;  %764 = vmatprep.subr.mxu1 %v305_v52  ;;  %v459_v45 = vld [vmem:[#allocation2 + $0xae8] sm:$0xff]  ;;  %v202_v46 = vld [vmem:[#allocation2 + $0x2e0] sm:$0xff] }
  0xa5   :  { %807 = vmatprep.subr.mxu0 %v417_v53  ;;  %765 = vmatpush2.msra.mxu1 %v304_v54  ;;  %v458_v47 = vld [vmem:[#allocation2 + $0xae0] sm:$0xff]  ;;  %v195_v48 = vld [vmem:[#allocation2 + $0x2a8] sm:$0xff] }
  0xa6   :  { %808 = vmatpush1.msra.mxu0 %v416_v55  ;;  %766 = vmatprep.subr.mxu1 %v297_v56  ;;  %v451_v49 = vld [vmem:[#allocation2 + $0xaa8] sm:$0xff]  ;;  %v194_v50 = vld [vmem:[#allocation2 + $0x2a0] sm:$0xff] }
  0xa7   :  { %809 = vmatprep.subr.mxu0 %v409_v57  ;;  %767 = vmatpush2.msra.mxu1 %v296_v58  ;;  %v450_v52 = vld [vmem:[#allocation2 + $0xaa0] sm:$0xff]  ;;  %v187_v53 = vld [vmem:[#allocation2 + $0x268] sm:$0xff] }
  0xa8   :  { %810 = vmatpush1.msra.mxu0 %v408_v60  ;;  %768 = vmatprep.subr.mxu1 %v289_v61  ;;  %v443_v54 = vld [vmem:[#allocation2 + $0xa68] sm:$0xff]  ;;  %v186_v55 = vld [vmem:[#allocation2 + $0x260] sm:$0xff] }
  0xa9   :  { %811 = vmatprep.subr.mxu0 %v401_v62  ;;  %769 = vmatpush2.msra.mxu1 %v288_v0  ;;  %v442_v56 = vld [vmem:[#allocation2 + $0xa60] sm:$0xff]  ;;  %v179_v57 = vld [vmem:[#allocation2 + $0x228] sm:$0xff] }
  0xaa   :  { %812 = vmatpush1.msra.mxu0 %v400_v1  ;;  %770 = vmatprep.subr.mxu1 %v281_v2  ;;  %v435_v58 = vld [vmem:[#allocation2 + $0xa28] sm:$0xff]  ;;  %v178_v60 = vld [vmem:[#allocation2 + $0x220] sm:$0xff] }
  0xab   :  { %813 = vmatprep.subr.mxu0 %v393_v4  ;;  %771 = vmatpush2.msra.mxu1 %v280_v5  ;;  %v434_v61 = vld [vmem:[#allocation2 + $0xa20] sm:$0xff]  ;;  %v171_v62 = vld [vmem:[#allocation2 + $0x1e8] sm:$0xff] }
  0xac   :  { %814 = vmatpush1.msra.mxu0 %v392_v6  ;;  %772 = vmatprep.subr.mxu1 %v273_v7  ;;  %v427_v0 = vld [vmem:[#allocation2 + $0x9e8] sm:$0xff]  ;;  %v170_v1 = vld [vmem:[#allocation2 + $0x1e0] sm:$0xff] }
  0xad   :  { %815 = vmatprep.subr.mxu0 %v385_v9  ;;  %773 = vmatpush2.msra.mxu1 %v272_v10  ;;  %v426_v2 = vld [vmem:[#allocation2 + $0x9e0] sm:$0xff]  ;;  %v163_v4 = vld [vmem:[#allocation2 + $0x1a8] sm:$0xff] }
  0xae   :  { %816 = vmatpush1.msra.mxu0 %v384_v11  ;;  %774 = vmatprep.subr.mxu1 %v265_v12  ;;  %v419_v5 = vld [vmem:[#allocation2 + $0x9a8] sm:$0xff]  ;;  %v162_v6 = vld [vmem:[#allocation2 + $0x1a0] sm:$0xff] }
  0xaf   :  { %817 = vmatprep.subr.mxu0 %v377_v63  ;;  %775 = vmatpush2.msra.mxu1 %v264_v13  ;;  %v418_v7 = vld [vmem:[#allocation2 + $0x9a0] sm:$0xff]  ;;  %v155_v9 = vld [vmem:[#allocation2 + $0x168] sm:$0xff] }
  0xb0   :  { %818 = vmatpush1.msra.mxu0 %v376_v14  ;;  %776 = vmatprep.subr.mxu1 %v257_v15  ;;  %v411_v10 = vld [vmem:[#allocation2 + $0x968] sm:$0xff]  ;;  %v154_v11 = vld [vmem:[#allocation2 + $0x160] sm:$0xff] }
  0xb1   :  { %819 = vmatprep.subr.mxu0 %v369_v16  ;;  %777 = vmatpush2.msra.mxu1 %v256_v18  ;;  %v410_v12 = vld [vmem:[#allocation2 + $0x960] sm:$0xff]  ;;  %v147_v63 = vld [vmem:[#allocation2 + $0x128] sm:$0xff] }
  0xb2   :  { %820 = vmatpush1.msra.mxu0 %v368_v19  ;;  %778 = vmatprep.subr.mxu1 %v249_v20  ;;  %v403_v13 = vld [vmem:[#allocation2 + $0x928] sm:$0xff]  ;;  %v146_v14 = vld [vmem:[#allocation2 + $0x120] sm:$0xff] }
  0xb3   :  { %849 = vmatprep.subr.mxu0 %v505_v21  ;;  %779 = vmatpush2.msra.mxu1 %v248_v22  ;;  %v402_v15 = vld [vmem:[#allocation2 + $0x920] sm:$0xff]  ;;  %v139_v16 = vld [vmem:[#allocation2 + $0xe8] sm:$0xff] }
  0xb4   :  { %850 = vmatpush2.msra.mxu0 %v504_v23  ;;  %780 = vmatprep.subr.mxu1 %v241_v24  ;;  %v395_v18 = vld [vmem:[#allocation2 + $0x8e8] sm:$0xff]  ;;  %v138_v19 = vld [vmem:[#allocation2 + $0xe0] sm:$0xff] }
  0xb5   :  { %851 = vmatprep.subr.mxu0 %v497_v25  ;;  %781 = vmatpush2.msra.mxu1 %v240_v26  ;;  %v394_v20 = vld [vmem:[#allocation2 + $0x8e0] sm:$0xff]  ;;  %v131_v21 = vld [vmem:[#allocation2 + $0xa8] sm:$0xff] }
  0xb6   :  { %782 = vmatprep.mubr.f32.mxu1 %v2272_v59  ;;  %852 = vmatpush2.msra.mxu0 %v496_v27  ;;  %v387_v22 = vld [vmem:[#allocation2 + $0x8a8] sm:$0xff]  ;;  %v130_v23 = vld [vmem:[#allocation2 + $0xa0] sm:$0xff] }
  0xb7   :  { %783 = vmatmul.mubr.f32.vlgmr.msra.gmra.mxu1 %v2268_v3  ;;  %1815 = vmatprep.mubr.msk.f32.mxu0 %vm573_vm0, %v2261_v17  ;;  %v386_v24 = vld [vmem:[#allocation2 + $0x8a0] sm:$0xff]  ;;  %v123_v25 = vld [vmem:[#allocation2 + $0x68] sm:$0xff] }
  0xb8   :  { %860 = vmatprep.subr.mxu0 %v235_v28  ;;  %931 = vmatprep.subr.mxu1 %v491_v29  ;;  %v379_v26 = vld [vmem:[#allocation2 + $0x868] sm:$0xff]  ;;  %v122_v27 = vld [vmem:[#allocation2 + $0x60] sm:$0xff] }
  0xb9   :  { %854 = vmatmul.mubr.f32.vlgmr.msra.gmra.mxu0 %v2257_v8  ;;  %932 = vmatpush1.msra.mxu1 %v490_v31  ;;  %v378_v28 = vld [vmem:[#allocation2 + $0x860] sm:$0xff]  ;;  %v115_v29 = vld [vmem:[#allocation2 + $0x28] sm:$0xff] }
  0xba   :  { %861 = vmatpush1.msra.mxu0 %v234_v30  ;;  %933 = vmatprep.subr.mxu1 %v483_v33  ;;  %v371_v30 = vld [vmem:[#allocation2 + $0x828] sm:$0xff]  ;;  %v114_v31 = vld [vmem:[#allocation2 + $0x20] sm:$0xff] }
  0xbb   :  { %862 = vmatprep.subr.mxu0 %v227_v32  ;;  %934 = vmatpush1.msra.mxu1 %v482_v35  ;;  %v370_v32 = vld [vmem:[#allocation2 + $0x820] sm:$0xff]  ;;  %v363_v33 = vld [vmem:[#allocation2 + $0x7e8] sm:$0xff] }
  0xbc   :  { %863 = vmatpush1.msra.mxu0 %v226_v34  ;;  %935 = vmatprep.subr.mxu1 %v475_v37  ;;  %v507_v34 = vld [vmem:[#allocation2 + $0xc68] sm:$0xff]  ;;  %v362_v35 = vld [vmem:[#allocation2 + $0x7e0] sm:$0xff] }
  0xbd   :  { %864 = vmatprep.subr.mxu0 %v219_v36  ;;  %936 = vmatpush1.msra.mxu1 %v474_v39  ;;  %v506_v36 = vld [vmem:[#allocation2 + $0xc60] sm:$0xff]  ;;  %v355_v37 = vld [vmem:[#allocation2 + $0x7a8] sm:$0xff] }
  0xbe   :  { %865 = vmatpush1.msra.mxu0 %v218_v38  ;;  %937 = vmatprep.subr.mxu1 %v467_v41  ;;  %v499_v38 = vld [vmem:[#allocation2 + $0xc28] sm:$0xff]  ;;  %v354_v39 = vld [vmem:[#allocation2 + $0x7a0] sm:$0xff] }
  0xbf   :  { %866 = vmatprep.subr.mxu0 %v211_v40  ;;  %938 = vmatpush1.msra.mxu1 %v466_v43  ;;  %v498_v40 = vld [vmem:[#allocation2 + $0xc20] sm:$0xff]  ;;  %v347_v41 = vld [vmem:[#allocation2 + $0x768] sm:$0xff] }
  0xc0   :  { %867 = vmatpush1.msra.mxu0 %v210_v42  ;;  %939 = vmatprep.subr.mxu1 %v459_v45  ;;  %v237_v42 = vld [vmem:[#allocation2 + $0x3f8] sm:$0xff]  ;;  %v346_v43 = vld [vmem:[#allocation2 + $0x760] sm:$0xff]  ;;  %v339_v45 = vld [vmem:[#allocation2 + $0x728] sm:$0xff] }
  0xc1   :  { %868 = vmatprep.subr.mxu0 %v203_v44  ;;  %940 = vmatpush1.msra.mxu1 %v458_v47  ;;  %v236_v44 = vld [vmem:[#allocation2 + $0x3f0] sm:$0xff]  ;;  %v338_v47 = vld [vmem:[#allocation2 + $0x720] sm:$0xff] }
  0xc2   :  { %869 = vmatpush1.msra.mxu0 %v202_v46  ;;  %941 = vmatprep.subr.mxu1 %v451_v49  ;;  %v229_v46 = vld [vmem:[#allocation2 + $0x3b8] sm:$0xff]  ;;  %v331_v49 = vld [vmem:[#allocation2 + $0x6e8] sm:$0xff] }
  0xc3   :  { %870 = vmatprep.subr.mxu0 %v195_v48  ;;  %942 = vmatpush1.msra.mxu1 %v450_v52  ;;  %v228_v48 = vld [vmem:[#allocation2 + $0x3b0] sm:$0xff]  ;;  %v330_v52 = vld [vmem:[#allocation2 + $0x6e0] sm:$0xff] }
  0xc4   :  { %871 = vmatpush1.msra.mxu0 %v194_v50  ;;  %943 = vmatprep.subr.mxu1 %v443_v54  ;;  %v221_v50 = vld [vmem:[#allocation2 + $0x378] sm:$0xff]  ;;  %v323_v54 = vld [vmem:[#allocation2 + $0x6a8] sm:$0xff] }
  0xc5   :  { %872 = vmatprep.subr.mxu0 %v187_v53  ;;  %944 = vmatpush1.msra.mxu1 %v442_v56  ;;  %v220_v53 = vld [vmem:[#allocation2 + $0x370] sm:$0xff]  ;;  %v322_v56 = vld [vmem:[#allocation2 + $0x6a0] sm:$0xff] }
  0xc6   :  { %873 = vmatpush1.msra.mxu0 %v186_v55  ;;  %945 = vmatprep.subr.mxu1 %v435_v58  ;;  %v213_v55 = vld [vmem:[#allocation2 + $0x338] sm:$0xff]  ;;  %v315_v58 = vld [vmem:[#allocation2 + $0x668] sm:$0xff] }
  0xc7   :  { %874 = vmatprep.subr.mxu0 %v179_v57  ;;  %946 = vmatpush1.msra.mxu1 %v434_v61  ;;  %v212_v57 = vld [vmem:[#allocation2 + $0x330] sm:$0xff]  ;;  %v314_v61 = vld [vmem:[#allocation2 + $0x660] sm:$0xff] }
  0xc8   :  { %875 = vmatpush1.msra.mxu0 %v178_v60  ;;  %947 = vmatprep.subr.mxu1 %v427_v0  ;;  %v205_v60 = vld [vmem:[#allocation2 + $0x2f8] sm:$0xff]  ;;  %v307_v0 = vld [vmem:[#allocation2 + $0x628] sm:$0xff] }
  0xc9   :  { %876 = vmatprep.subr.mxu0 %v171_v62  ;;  %948 = vmatpush1.msra.mxu1 %v426_v2  ;;  %v204_v62 = vld [vmem:[#allocation2 + $0x2f0] sm:$0xff]  ;;  %v306_v2 = vld [vmem:[#allocation2 + $0x620] sm:$0xff] }
  0xca   :  { %877 = vmatpush1.msra.mxu0 %v170_v1  ;;  %949 = vmatprep.subr.mxu1 %v419_v5  ;;  %v197_v1 = vld [vmem:[#allocation2 + $0x2b8] sm:$0xff]  ;;  %v299_v5 = vld [vmem:[#allocation2 + $0x5e8] sm:$0xff] }
  0xcb   :  { %878 = vmatprep.subr.mxu0 %v163_v4  ;;  %950 = vmatpush1.msra.mxu1 %v418_v7  ;;  %v196_v4 = vld [vmem:[#allocation2 + $0x2b0] sm:$0xff]  ;;  %v298_v7 = vld [vmem:[#allocation2 + $0x5e0] sm:$0xff] }
  0xcc   :  { %879 = vmatpush1.msra.mxu0 %v162_v6  ;;  %951 = vmatprep.subr.mxu1 %v411_v10  ;;  %v189_v6 = vld [vmem:[#allocation2 + $0x278] sm:$0xff]  ;;  %v291_v10 = vld [vmem:[#allocation2 + $0x5a8] sm:$0xff] }
  0xcd   :  { %880 = vmatprep.subr.mxu0 %v155_v9  ;;  %952 = vmatpush1.msra.mxu1 %v410_v12  ;;  %v188_v9 = vld [vmem:[#allocation2 + $0x270] sm:$0xff]  ;;  %v290_v12 = vld [vmem:[#allocation2 + $0x5a0] sm:$0xff] }
  0xce   :  { %881 = vmatpush1.msra.mxu0 %v154_v11  ;;  %953 = vmatprep.subr.mxu1 %v403_v13  ;;  %v181_v11 = vld [vmem:[#allocation2 + $0x238] sm:$0xff]  ;;  %v283_v13 = vld [vmem:[#allocation2 + $0x568] sm:$0xff] }
  0xcf   :  { %882 = vmatprep.subr.mxu0 %v147_v63  ;;  %954 = vmatpush1.msra.mxu1 %v402_v15  ;;  %v180_v63 = vld [vmem:[#allocation2 + $0x230] sm:$0xff]  ;;  %v282_v15 = vld [vmem:[#allocation2 + $0x560] sm:$0xff] }
  0xd0   :  { %883 = vmatpush1.msra.mxu0 %v146_v14  ;;  %955 = vmatprep.subr.mxu1 %v395_v18  ;;  %v173_v14 = vld [vmem:[#allocation2 + $0x1f8] sm:$0xff]  ;;  %v275_v18 = vld [vmem:[#allocation2 + $0x528] sm:$0xff] }
  0xd1   :  { %884 = vmatprep.subr.mxu0 %v139_v16  ;;  %956 = vmatpush1.msra.mxu1 %v394_v20  ;;  %v172_v16 = vld [vmem:[#allocation2 + $0x1f0] sm:$0xff]  ;;  %v274_v20 = vld [vmem:[#allocation2 + $0x520] sm:$0xff] }
  0xd2   :  { %885 = vmatpush1.msra.mxu0 %v138_v19  ;;  %957 = vmatprep.subr.mxu1 %v387_v22  ;;  %v165_v19 = vld [vmem:[#allocation2 + $0x1b8] sm:$0xff]  ;;  %v267_v22 = vld [vmem:[#allocation2 + $0x4e8] sm:$0xff] }
  0xd3   :  { %886 = vmatprep.subr.mxu0 %v131_v21  ;;  %958 = vmatpush1.msra.mxu1 %v386_v24  ;;  %v164_v21 = vld [vmem:[#allocation2 + $0x1b0] sm:$0xff]  ;;  %v266_v24 = vld [vmem:[#allocation2 + $0x4e0] sm:$0xff] }
  0xd4   :  { %887 = vmatpush1.msra.mxu0 %v130_v23  ;;  %959 = vmatprep.subr.mxu1 %v379_v26  ;;  %v157_v23 = vld [vmem:[#allocation2 + $0x178] sm:$0xff]  ;;  %v259_v26 = vld [vmem:[#allocation2 + $0x4a8] sm:$0xff] }
  0xd5   :  { %888 = vmatprep.subr.mxu0 %v123_v25  ;;  %960 = vmatpush1.msra.mxu1 %v378_v28  ;;  %v156_v25 = vld [vmem:[#allocation2 + $0x170] sm:$0xff]  ;;  %v258_v28 = vld [vmem:[#allocation2 + $0x4a0] sm:$0xff] }
  0xd6   :  { %889 = vmatpush1.msra.mxu0 %v122_v27  ;;  %961 = vmatprep.subr.mxu1 %v371_v30  ;;  %v149_v27 = vld [vmem:[#allocation2 + $0x138] sm:$0xff]  ;;  %v251_v30 = vld [vmem:[#allocation2 + $0x468] sm:$0xff] }
  0xd7   :  { %890 = vmatprep.subr.mxu0 %v115_v29  ;;  %962 = vmatpush1.msra.mxu1 %v370_v32  ;;  %v148_v29 = vld [vmem:[#allocation2 + $0x130] sm:$0xff]  ;;  %v250_v32 = vld [vmem:[#allocation2 + $0x460] sm:$0xff] }
  0xd8   :  { %891 = vmatpush1.msra.mxu0 %v114_v31  ;;  %991 = vmatprep.subr.mxu1 %v507_v34  ;;  %v141_v31 = vld [vmem:[#allocation2 + $0xf8] sm:$0xff]  ;;  %v243_v34 = vld [vmem:[#allocation2 + $0x428] sm:$0xff] }
  0xd9   :  { %892 = vmatprep.subr.mxu0 %v363_v33  ;;  %992 = vmatpush2.msra.mxu1 %v506_v36  ;;  %v140_v33 = vld [vmem:[#allocation2 + $0xf0] sm:$0xff]  ;;  %v242_v36 = vld [vmem:[#allocation2 + $0x420] sm:$0xff] }
  0xda   :  { %893 = vmatpush2.msra.mxu0 %v362_v35  ;;  %993 = vmatprep.subr.mxu1 %v499_v38  ;;  %v133_v35 = vld [vmem:[#allocation2 + $0xb8] sm:$0xff] }
  0xdb   :  { %894 = vmatprep.subr.mxu0 %v355_v37  ;;  %994 = vmatpush2.msra.mxu1 %v498_v40  ;;  %v132_v37 = vld [vmem:[#allocation2 + $0xb0] sm:$0xff]  ;;  %v125_v38 = vld [vmem:[#allocation2 + $0x78] sm:$0xff] }
  0xdc   :  { %895 = vmatpush2.msra.mxu0 %v354_v39  ;;  %1816 = vmatprep.mubr.msk.f32.mxu1 %vm573_vm0, %v2261_v17  ;;  %v493_v39 = vld [vmem:[#allocation2 + $0xbf8] sm:$0xff]  ;;  %v124_v40 = vld [vmem:[#allocation2 + $0x70] sm:$0xff] }
  0xdd   :  { %896 = vmatprep.subr.mxu0 %v347_v41  ;;  %996 = vmatmul.mubr.f32.vlgmr.msra.gmra.mxu1 %v2257_v8  ;;  %v492_v41 = vld [vmem:[#allocation2 + $0xbf0] sm:$0xff] }
  0xde   :  { %1002 = vmatprep.subr.mxu1 %v237_v42  ;;  %897 = vmatpush2.msra.mxu0 %v346_v43  ;;  %v117_v42 = vld [vmem:[#allocation2 + $0x38] sm:$0xff] }
  0xdf   :  { %1003 = vmatpush1.msra.mxu1 %v236_v44  ;;  %898 = vmatprep.subr.mxu0 %v339_v45  ;;  %v485_v43 = vld [vmem:[#allocation2 + $0xbb8] sm:$0xff]  ;;  %v116_v44 = vld [vmem:[#allocation2 + $0x30] sm:$0xff] }
  0xe0   :  { %1004 = vmatprep.subr.mxu1 %v229_v46  ;;  %899 = vmatpush2.msra.mxu0 %v338_v47  ;;  %v484_v45 = vld [vmem:[#allocation2 + $0xbb0] sm:$0xff]  ;;  %v365_v46 = vld [vmem:[#allocation2 + $0x7f8] sm:$0xff] }
  0xe1   :  { %1005 = vmatpush1.msra.mxu1 %v228_v48  ;;  %900 = vmatprep.subr.mxu0 %v331_v49  ;;  %v477_v47 = vld [vmem:[#allocation2 + $0xb78] sm:$0xff]  ;;  %v364_v48 = vld [vmem:[#allocation2 + $0x7f0] sm:$0xff] }
  0xe2   :  { %1006 = vmatprep.subr.mxu1 %v221_v50  ;;  %901 = vmatpush2.msra.mxu0 %v330_v52  ;;  %v476_v49 = vld [vmem:[#allocation2 + $0xb70] sm:$0xff]  ;;  %v357_v50 = vld [vmem:[#allocation2 + $0x7b8] sm:$0xff] }
  0xe3   :  { %1007 = vmatpush1.msra.mxu1 %v220_v53  ;;  %902 = vmatprep.subr.mxu0 %v323_v54  ;;  %v469_v52 = vld [vmem:[#allocation2 + $0xb38] sm:$0xff]  ;;  %v356_v53 = vld [vmem:[#allocation2 + $0x7b0] sm:$0xff] }
  0xe4   :  { %1008 = vmatprep.subr.mxu1 %v213_v55  ;;  %903 = vmatpush2.msra.mxu0 %v322_v56  ;;  %v468_v54 = vld [vmem:[#allocation2 + $0xb30] sm:$0xff]  ;;  %v349_v55 = vld [vmem:[#allocation2 + $0x778] sm:$0xff] }
  0xe5   :  { %1009 = vmatpush1.msra.mxu1 %v212_v57  ;;  %904 = vmatprep.subr.mxu0 %v315_v58  ;;  %v461_v56 = vld [vmem:[#allocation2 + $0xaf8] sm:$0xff]  ;;  %v348_v57 = vld [vmem:[#allocation2 + $0x770] sm:$0xff] }
  0xe6   :  { %1010 = vmatprep.subr.mxu1 %v205_v60  ;;  %905 = vmatpush2.msra.mxu0 %v314_v61  ;;  %v460_v58 = vld [vmem:[#allocation2 + $0xaf0] sm:$0xff]  ;;  %v341_v60 = vld [vmem:[#allocation2 + $0x738] sm:$0xff] }
  0xe7   :  { %1011 = vmatpush1.msra.mxu1 %v204_v62  ;;  %906 = vmatprep.subr.mxu0 %v307_v0  ;;  %v453_v61 = vld [vmem:[#allocation2 + $0xab8] sm:$0xff]  ;;  %v340_v62 = vld [vmem:[#allocation2 + $0x730] sm:$0xff] }
  0xe8   :  { %1012 = vmatprep.subr.mxu1 %v197_v1  ;;  %907 = vmatpush2.msra.mxu0 %v306_v2  ;;  %v452_v0 = vld [vmem:[#allocation2 + $0xab0] sm:$0xff]  ;;  %v333_v1 = vld [vmem:[#allocation2 + $0x6f8] sm:$0xff] }
  0xe9   :  { %1013 = vmatpush1.msra.mxu1 %v196_v4  ;;  %908 = vmatprep.subr.mxu0 %v299_v5  ;;  %v445_v2 = vld [vmem:[#allocation2 + $0xa78] sm:$0xff]  ;;  %v332_v4 = vld [vmem:[#allocation2 + $0x6f0] sm:$0xff] }
  0xea   :  { %1014 = vmatprep.subr.mxu1 %v189_v6  ;;  %909 = vmatpush2.msra.mxu0 %v298_v7  ;;  %v444_v5 = vld [vmem:[#allocation2 + $0xa70] sm:$0xff]  ;;  %v325_v6 = vld [vmem:[#allocation2 + $0x6b8] sm:$0xff] }
  0xeb   :  { %1015 = vmatpush1.msra.mxu1 %v188_v9  ;;  %910 = vmatprep.subr.mxu0 %v291_v10  ;;  %v437_v7 = vld [vmem:[#allocation2 + $0xa38] sm:$0xff]  ;;  %v324_v9 = vld [vmem:[#allocation2 + $0x6b0] sm:$0xff] }
  0xec   :  { %1016 = vmatprep.subr.mxu1 %v181_v11  ;;  %911 = vmatpush2.msra.mxu0 %v290_v12  ;;  %v436_v10 = vld [vmem:[#allocation2 + $0xa30] sm:$0xff]  ;;  %v317_v11 = vld [vmem:[#allocation2 + $0x678] sm:$0xff] }
  0xed   :  { %1017 = vmatpush1.msra.mxu1 %v180_v63  ;;  %912 = vmatprep.subr.mxu0 %v283_v13  ;;  %v429_v12 = vld [vmem:[#allocation2 + $0x9f8] sm:$0xff]  ;;  %v316_v63 = vld [vmem:[#allocation2 + $0x670] sm:$0xff] }
  0xee   :  { %1018 = vmatprep.subr.mxu1 %v173_v14  ;;  %913 = vmatpush2.msra.mxu0 %v282_v15  ;;  %v428_v13 = vld [vmem:[#allocation2 + $0x9f0] sm:$0xff]  ;;  %v309_v14 = vld [vmem:[#allocation2 + $0x638] sm:$0xff] }
  0xef   :  { %1019 = vmatpush1.msra.mxu1 %v172_v16  ;;  %914 = vmatprep.subr.mxu0 %v275_v18  ;;  %v421_v15 = vld [vmem:[#allocation2 + $0x9b8] sm:$0xff]  ;;  %v308_v16 = vld [vmem:[#allocation2 + $0x630] sm:$0xff] }
  0xf0   :  { %1020 = vmatprep.subr.mxu1 %v165_v19  ;;  %915 = vmatpush2.msra.mxu0 %v274_v20  ;;  %v420_v18 = vld [vmem:[#allocation2 + $0x9b0] sm:$0xff]  ;;  %v301_v19 = vld [vmem:[#allocation2 + $0x5f8] sm:$0xff] }
  0xf1   :  { %1021 = vmatpush1.msra.mxu1 %v164_v21  ;;  %916 = vmatprep.subr.mxu0 %v267_v22  ;;  %v413_v20 = vld [vmem:[#allocation2 + $0x978] sm:$0xff]  ;;  %v300_v21 = vld [vmem:[#allocation2 + $0x5f0] sm:$0xff] }
  0xf2   :  { %1022 = vmatprep.subr.mxu1 %v157_v23  ;;  %917 = vmatpush2.msra.mxu0 %v266_v24  ;;  %v412_v22 = vld [vmem:[#allocation2 + $0x970] sm:$0xff]  ;;  %v293_v23 = vld [vmem:[#allocation2 + $0x5b8] sm:$0xff] }
  0xf3   :  { %1023 = vmatpush1.msra.mxu1 %v156_v25  ;;  %918 = vmatprep.subr.mxu0 %v259_v26  ;;  %v405_v24 = vld [vmem:[#allocation2 + $0x938] sm:$0xff]  ;;  %v292_v25 = vld [vmem:[#allocation2 + $0x5b0] sm:$0xff] }
  0xf4   :  { %1024 = vmatprep.subr.mxu1 %v149_v27  ;;  %919 = vmatpush2.msra.mxu0 %v258_v28  ;;  %v404_v26 = vld [vmem:[#allocation2 + $0x930] sm:$0xff]  ;;  %v285_v27 = vld [vmem:[#allocation2 + $0x578] sm:$0xff] }
  0xf5   :  { %1025 = vmatpush1.msra.mxu1 %v148_v29  ;;  %920 = vmatprep.subr.mxu0 %v251_v30  ;;  %v397_v28 = vld [vmem:[#allocation2 + $0x8f8] sm:$0xff]  ;;  %v284_v29 = vld [vmem:[#allocation2 + $0x570] sm:$0xff] }
  0xf6   :  { %1026 = vmatprep.subr.mxu1 %v141_v31  ;;  %921 = vmatpush2.msra.mxu0 %v250_v32  ;;  %v396_v30 = vld [vmem:[#allocation2 + $0x8f0] sm:$0xff]  ;;  %v277_v31 = vld [vmem:[#allocation2 + $0x538] sm:$0xff] }
  0xf7   :  { %1027 = vmatpush1.msra.mxu1 %v140_v33  ;;  %922 = vmatprep.subr.mxu0 %v243_v34  ;;  %v389_v32 = vld [vmem:[#allocation2 + $0x8b8] sm:$0xff]  ;;  %v276_v33 = vld [vmem:[#allocation2 + $0x530] sm:$0xff] }
  0xf8   :  { %1028 = vmatprep.subr.mxu1 %v133_v35  ;;  %923 = vmatpush2.msra.mxu0 %v242_v36  ;;  %v388_v34 = vld [vmem:[#allocation2 + $0x8b0] sm:$0xff]  ;;  %v269_v35 = vld [vmem:[#allocation2 + $0x4f8] sm:$0xff] }
  0xf9   :  { %924 = vmatprep.mubr.f32.mxu0 %v2272_v59  ;;  %1029 = vmatpush1.msra.mxu1 %v132_v37  ;;  %v381_v36 = vld [vmem:[#allocation2 + $0x878] sm:$0xff]  ;;  %v268_v37 = vld [vmem:[#allocation2 + $0x4f0] sm:$0xff] }
  0xfa   :  { %925 = vmatmul.mubr.f32.vlgmr.msra.gmra.mxu0 %v2268_v3  ;;  %1030 = vmatprep.subr.mxu1 %v125_v38  ;;  %v380_v38 = vld [vmem:[#allocation2 + $0x870] sm:$0xff] }
  0xfb   :  { %1073 = vmatprep.subr.mxu0 %v493_v39  ;;  %1031 = vmatpush1.msra.mxu1 %v124_v40  ;;  %v261_v39 = vld [vmem:[#allocation2 + $0x4b8] sm:$0xff] }
  0xfc   :  { %1074 = vmatpush1.msra.mxu0 %v492_v41  ;;  %1032 = vmatprep.subr.mxu1 %v117_v42  ;;  %v373_v40 = vld [vmem:[#allocation2 + $0x838] sm:$0xff]  ;;  %v260_v41 = vld [vmem:[#allocation2 + $0x4b0] sm:$0xff] }
  0xfd   :  { %1075 = vmatprep.subr.mxu0 %v485_v43  ;;  %1033 = vmatpush1.msra.mxu1 %v116_v44  ;;  %v372_v42 = vld [vmem:[#allocation2 + $0x830] sm:$0xff]  ;;  %v253_v43 = vld [vmem:[#allocation2 + $0x478] sm:$0xff] }
  0xfe   :  { %1076 = vmatpush1.msra.mxu0 %v484_v45  ;;  %1034 = vmatprep.subr.mxu1 %v365_v46  ;;  %v509_v44 = vld [vmem:[#allocation2 + $0xc78] sm:$0xff]  ;;  %v252_v45 = vld [vmem:[#allocation2 + $0x470] sm:$0xff] }
  0xff   :  { %1077 = vmatprep.subr.mxu0 %v477_v47  ;;  %1035 = vmatpush2.msra.mxu1 %v364_v48  ;;  %v508_v46 = vld [vmem:[#allocation2 + $0xc70] sm:$0xff]  ;;  %v245_v47 = vld [vmem:[#allocation2 + $0x438] sm:$0xff] }
 0x100   :  { %1078 = vmatpush1.msra.mxu0 %v476_v49  ;;  %1036 = vmatprep.subr.mxu1 %v357_v50  ;;  %v501_v48 = vld [vmem:[#allocation2 + $0xc38] sm:$0xff]  ;;  %v244_v49 = vld [vmem:[#allocation2 + $0x430] sm:$0xff] }
 0x101   :  { %1079 = vmatprep.subr.mxu0 %v469_v52  ;;  %1037 = vmatpush2.msra.mxu1 %v356_v53  ;;  %v500_v50 = vld [vmem:[#allocation2 + $0xc30] sm:$0xff]  ;;  %v1183_v52 = vld [vmem:[#allocation7 + $0xf8] sm:$0xff] }
 0x102   :  { %1080 = vmatpush1.msra.mxu0 %v468_v54  ;;  %1038 = vmatprep.subr.mxu1 %v349_v55  ;;  %v1215_v53 = vld [vmem:[#allocation7 + $0x1f8] sm:$0xff] }
 0x103   :  { %1081 = vmatprep.subr.mxu0 %v461_v56  ;;  %1039 = vmatpush2.msra.mxu1 %v348_v57  ;;  %v1167_v54 = vld [vmem:[#allocation7 + $0x78] sm:$0xff]  ;;  %v1182_v56 = vld [vmem:[#allocation7 + $0xf0] sm:$0xff] }
 0x104   :  { %1082 = vmatpush1.msra.mxu0 %v460_v58  ;;  %1040 = vmatprep.subr.mxu1 %v341_v60  ;;  %v1199_v55 = vld [vmem:[#allocation7 + $0x178] sm:$0xff]  ;;  %v1214_v57 = vld [vmem:[#allocation7 + $0x1f0] sm:$0xff] }
 0x105   :  { %1083 = vmatprep.subr.mxu0 %v453_v61  ;;  %1041 = vmatpush2.msra.mxu1 %v340_v62  ;;  %v1166_v58 = vld [vmem:[#allocation7 + $0x70] sm:$0xff]  ;;  %v1213_v61 = vld [vmem:[#allocation7 + $0x1e8] sm:$0xff] }
 0x106   :  { %1084 = vmatpush1.msra.mxu0 %v452_v0  ;;  %1042 = vmatprep.subr.mxu1 %v333_v1  ;;  %v1198_v60 = vld [vmem:[#allocation7 + $0x170] sm:$0xff]  ;;  %v1165_v62 = vld [vmem:[#allocation7 + $0x68] sm:$0xff]  ;;  %v1180_v0 = vld [vmem:[#allocation7 + $0xe0] sm:$0xff] }
 0x107   :  { %1085 = vmatprep.subr.mxu0 %v445_v2  ;;  %1043 = vmatpush2.msra.mxu1 %v332_v4  ;;  %v1196_v1 = vld [vmem:[#allocation7 + $0x160] sm:$0xff]  ;;  %v1179_v2 = vld [vmem:[#allocation7 + $0xd8] sm:$0xff] }
 0x108   :  { %1086 = vmatpush1.msra.mxu0 %v444_v5  ;;  %1044 = vmatprep.subr.mxu1 %v325_v6  ;;  %v1211_v4 = vld [vmem:[#allocation7 + $0x1d8] sm:$0xff] }
 0x109   :  { %1087 = vmatprep.subr.mxu0 %v437_v7  ;;  %1045 = vmatpush2.msra.mxu1 %v324_v9  ;;  %v1163_v5 = vld [vmem:[#allocation7 + $0x58] sm:$0xff]  ;;  %v1178_v7 = vld [vmem:[#allocation7 + $0xd0] sm:$0xff] }
 0x10a   :  { %1088 = vmatpush1.msra.mxu0 %v436_v10  ;;  %1046 = vmatprep.subr.mxu1 %v317_v11  ;;  %v1195_v6 = vld [vmem:[#allocation7 + $0x158] sm:$0xff]  ;;  %v1210_v9 = vld [vmem:[#allocation7 + $0x1d0] sm:$0xff] }
 0x10b   :  { %1089 = vmatprep.subr.mxu0 %v429_v12  ;;  %1047 = vmatpush2.msra.mxu1 %v316_v63  ;;  %v1162_v10 = vld [vmem:[#allocation7 + $0x50] sm:$0xff]  ;;  %v1177_v12 = vld [vmem:[#allocation7 + $0xc8] sm:$0xff] }
 0x10c   :  { %1090 = vmatpush1.msra.mxu0 %v428_v13  ;;  %1048 = vmatprep.subr.mxu1 %v309_v14  ;;  %v1194_v11 = vld [vmem:[#allocation7 + $0x150] sm:$0xff]  ;;  %v1209_v63 = vld [vmem:[#allocation7 + $0x1c8] sm:$0xff] }
 0x10d   :  { %1091 = vmatprep.subr.mxu0 %v421_v15  ;;  %1049 = vmatpush2.msra.mxu1 %v308_v16  ;;  %v1161_v13 = vld [vmem:[#allocation7 + $0x48] sm:$0xff]  ;;  %v1176_v15 = vld [vmem:[#allocation7 + $0xc0] sm:$0xff] }
 0x10e   :  { %1092 = vmatpush1.msra.mxu0 %v420_v18  ;;  %1050 = vmatprep.subr.mxu1 %v301_v19  ;;  %v1193_v14 = vld [vmem:[#allocation7 + $0x148] sm:$0xff]  ;;  %v1208_v16 = vld [vmem:[#allocation7 + $0x1c0] sm:$0xff] }
 0x10f   :  { %1093 = vmatprep.subr.mxu0 %v413_v20  ;;  %1051 = vmatpush2.msra.mxu1 %v300_v21  ;;  %v1160_v18 = vld [vmem:[#allocation7 + $0x40] sm:$0xff]  ;;  %v1175_v20 = vld [vmem:[#allocation7 + $0xb8] sm:$0xff] }
 0x110   :  { %1094 = vmatpush1.msra.mxu0 %v412_v22  ;;  %1052 = vmatprep.subr.mxu1 %v293_v23  ;;  %v1192_v19 = vld [vmem:[#allocation7 + $0x140] sm:$0xff]  ;;  %v1207_v21 = vld [vmem:[#allocation7 + $0x1b8] sm:$0xff] }
 0x111   :  { %1095 = vmatprep.subr.mxu0 %v405_v24  ;;  %1053 = vmatpush2.msra.mxu1 %v292_v25  ;;  %v1159_v22 = vld [vmem:[#allocation7 + $0x38] sm:$0xff]  ;;  %v1174_v24 = vld [vmem:[#allocation7 + $0xb0] sm:$0xff] }
 0x112   :  { %1096 = vmatpush1.msra.mxu0 %v404_v26  ;;  %1054 = vmatprep.subr.mxu1 %v285_v27  ;;  %v1191_v23 = vld [vmem:[#allocation7 + $0x138] sm:$0xff]  ;;  %v1206_v25 = vld [vmem:[#allocation7 + $0x1b0] sm:$0xff] }
 0x113   :  { %1097 = vmatprep.subr.mxu0 %v397_v28  ;;  %1055 = vmatpush2.msra.mxu1 %v284_v29  ;;  %v1158_v26 = vld [vmem:[#allocation7 + $0x30] sm:$0xff]  ;;  %v1173_v28 = vld [vmem:[#allocation7 + $0xa8] sm:$0xff] }
 0x114   :  { %1098 = vmatpush1.msra.mxu0 %v396_v30  ;;  %1056 = vmatprep.subr.mxu1 %v277_v31  ;;  %v1190_v27 = vld [vmem:[#allocation7 + $0x130] sm:$0xff]  ;;  %v1205_v29 = vld [vmem:[#allocation7 + $0x1a8] sm:$0xff] }
 0x115   :  { %1099 = vmatprep.subr.mxu0 %v389_v32  ;;  %1057 = vmatpush2.msra.mxu1 %v276_v33  ;;  %v1157_v30 = vld [vmem:[#allocation7 + $0x28] sm:$0xff]  ;;  %v1172_v32 = vld [vmem:[#allocation7 + $0xa0] sm:$0xff] }
 0x116   :  { %1100 = vmatpush1.msra.mxu0 %v388_v34  ;;  %1058 = vmatprep.subr.mxu1 %v269_v35  ;;  %v1189_v31 = vld [vmem:[#allocation7 + $0x128] sm:$0xff]  ;;  %v1204_v33 = vld [vmem:[#allocation7 + $0x1a0] sm:$0xff] }
 0x117   :  { %1101 = vmatprep.subr.mxu0 %v381_v36  ;;  %1059 = vmatpush2.msra.mxu1 %v268_v37  ;;  %v1156_v34 = vld [vmem:[#allocation7 + $0x20] sm:$0xff]  ;;  %v1171_v36 = vld [vmem:[#allocation7 + $0x98] sm:$0xff] }
 0x118   :  { %1102 = vmatpush1.msra.mxu0 %v380_v38  ;;  %1060 = vmatprep.subr.mxu1 %v261_v39  ;;  %v1188_v35 = vld [vmem:[#allocation7 + $0x120] sm:$0xff]  ;;  %v1203_v37 = vld [vmem:[#allocation7 + $0x198] sm:$0xff] }
 0x119   :  { %1103 = vmatprep.subr.mxu0 %v373_v40  ;;  %1061 = vmatpush2.msra.mxu1 %v260_v41  ;;  %v1155_v38 = vld [vmem:[#allocation7 + $0x18] sm:$0xff]  ;;  %v1170_v40 = vld [vmem:[#allocation7 + $0x90] sm:$0xff] }
 0x11a   :  { %1104 = vmatpush1.msra.mxu0 %v372_v42  ;;  %1062 = vmatprep.subr.mxu1 %v253_v43  ;;  %v1187_v39 = vld [vmem:[#allocation7 + $0x118] sm:$0xff]  ;;  %v1202_v41 = vld [vmem:[#allocation7 + $0x190] sm:$0xff] }
 0x11b   :  { %1133 = vmatprep.subr.mxu0 %v509_v44  ;;  %1063 = vmatpush2.msra.mxu1 %v252_v45  ;;  %v1154_v42 = vld [vmem:[#allocation7 + $0x10] sm:$0xff]  ;;  %v1169_v44 = vld [vmem:[#allocation7 + $0x88] sm:$0xff] }
 0x11c   :  { %1134 = vmatpush2.msra.mxu0 %v508_v46  ;;  %1064 = vmatprep.subr.mxu1 %v245_v47  ;;  %v1186_v43 = vld [vmem:[#allocation7 + $0x110] sm:$0xff]  ;;  %v1201_v45 = vld [vmem:[#allocation7 + $0x188] sm:$0xff] }
 0x11d   :  { %1135 = vmatprep.subr.mxu0 %v501_v48  ;;  %1065 = vmatpush2.msra.mxu1 %v244_v49  ;;  %v1153_v46 = vld [vmem:[#allocation7 + $0x8] sm:$0xff]  ;;  %v1168_v48 = vld [vmem:[#allocation7 + $0x80] sm:$0xff] }
 0x11e   :  { %1066 = vmatprep.mubr.f32.mxu1 %v2272_v59  ;;  %1136 = vmatpush2.msra.mxu0 %v500_v50  ;;  %v1181_v59 = vld [vmem:[#allocation7 + $0xe8] sm:$0xff]  ;;  %v1200_v49 = vld [vmem:[#allocation7 + $0x180] sm:$0xff] }
 0x11f   :  { %1817 = vmatprep.mubr.msk.f32.mxu0 %vm573_vm0, %v2261_v17  ;;  %1067 = vmatmul.mubr.f32.vlgmr.msra.gmra.mxu1 %v2268_v3  ;;  %v1197_v17 = vld [vmem:[#allocation7 + $0x168] sm:$0xff]  ;;  %v1212_v3 = vld [vmem:[#allocation7 + $0x1e0] sm:$0xff] }
 0x120   :  { %1138 = vmatmul.mubr.f32.vlgmr.msra.gmra.mxu0 %v2257_v8  ;;  %1820 = vmatprep.subr.mxu0 %v1183_v52  ;;  %v1164_v8 = vld [vmem:[#allocation7 + $0x60] sm:$0xff]  ;;  %v1185_v47 = vld [vmem:[#allocation7 + $0x108] sm:$0xff] }
 0x121   :  { %1855 = vmatprep.subr.mxu1 %v1215_v53  ;;  %1821 = vmatpush3.msra.mxu0 %v1167_v54  ;;  %v1152_v50 = vld [vmem:[#allocation7] sm:$0xff]  ;;  %v1247_v53 = vld [vmem:[#allocation7 + $0x2f8] sm:$0xff] }
 0x122   :  { %1856 = vmatpush3.msra.mxu1 %v1199_v55  ;;  %1822 = vmatprep.subr.mxu0 %v1182_v56  ;;  %v1184_v52 = vld [vmem:[#allocation7 + $0x100] sm:$0xff]  ;;  %v1279_v54 = vld [vmem:[#allocation7 + $0x3f8] sm:$0xff]  ;;  %v514_v55 = vsub.s32 0, %v2244_v51 }
 0x123   :  { %1857 = vmatprep.subr.mxu1 %v1214_v57  ;;  %1823 = vmatpush3.msra.mxu0 %v1166_v58  ;;  %v2292_v56 = vld [vmem:[#allocation5] sm:$0xff]  ;;  %v518_v57 = vsub.s32 1, %v2244_v51 }
 0x124   :  { %1858 = vmatpush3.msra.mxu1 %v1198_v60  ;;  %1824 = vmatprep.subr.mxu0 %v1181_v59  ;;  %v515_v58 = vrot.slane %v2292_v56, %v514_v55 }
 0x125   :  { %1859 = vmatprep.subr.mxu1 %v1213_v61  ;;  %1825 = vmatpush3.msra.mxu0 %v1165_v62  ;;  %v519_v60 = vrot.slane %v2292_v56, %v518_v57 }
 0x126   :  { %1860 = vmatpush3.msra.mxu1 %v1197_v17  ;;  %1826 = vmatprep.subr.mxu0 %v1180_v0 }
 0x127   :  { %1861 = vmatprep.subr.mxu1 %v1212_v3  ;;  %1827 = vmatpush3.msra.mxu0 %v1164_v8 }
 0x128   :  { %1862 = vmatpush3.msra.mxu1 %v1196_v1  ;;  %1828 = vmatprep.subr.mxu0 %v1179_v2 }
 0x129   :  { %1863 = vmatprep.subr.mxu1 %v1211_v4  ;;  %1829 = vmatpush3.msra.mxu0 %v1163_v5  ;;  %v1231_v5 = vld [vmem:[#allocation7 + $0x278] sm:$0xff] }
 0x12a   :  { %1864 = vmatpush3.msra.mxu1 %v1195_v6  ;;  %1830 = vmatprep.subr.mxu0 %v1178_v7  ;;  %v1246_v6 = vld [vmem:[#allocation7 + $0x2f0] sm:$0xff] }
 0x12b   :  { %1865 = vmatprep.subr.mxu1 %v1210_v9  ;;  %1831 = vmatpush3.msra.mxu0 %v1162_v10  ;;  %v1230_v7 = vld [vmem:[#allocation7 + $0x270] sm:$0xff]  ;;  %v1245_v9 = vld [vmem:[#allocation7 + $0x2e8] sm:$0xff] }
 0x12c   :  { %1866 = vmatpush3.msra.mxu1 %v1194_v11  ;;  %1832 = vmatprep.subr.mxu0 %v1177_v12  ;;  %v1229_v10 = vld [vmem:[#allocation7 + $0x268] sm:$0xff]  ;;  %v1244_v11 = vld [vmem:[#allocation7 + $0x2e0] sm:$0xff] }
 0x12d   :  { %1867 = vmatprep.subr.mxu1 %v1209_v63  ;;  %1833 = vmatpush3.msra.mxu0 %v1161_v13  ;;  %v1228_v12 = vld [vmem:[#allocation7 + $0x260] sm:$0xff]  ;;  %v1243_v63 = vld [vmem:[#allocation7 + $0x2d8] sm:$0xff] }
 0x12e   :  { %1868 = vmatpush3.msra.mxu1 %v1193_v14  ;;  %1834 = vmatprep.subr.mxu0 %v1176_v15  ;;  %v1227_v13 = vld [vmem:[#allocation7 + $0x258] sm:$0xff]  ;;  %v1242_v14 = vld [vmem:[#allocation7 + $0x2d0] sm:$0xff] }
 0x12f   :  { %1869 = vmatprep.subr.mxu1 %v1208_v16  ;;  %1835 = vmatpush3.msra.mxu0 %v1160_v18  ;;  %v1226_v15 = vld [vmem:[#allocation7 + $0x250] sm:$0xff]  ;;  %v1241_v16 = vld [vmem:[#allocation7 + $0x2c8] sm:$0xff] }
 0x130   :  { %1870 = vmatpush3.msra.mxu1 %v1192_v19  ;;  %1836 = vmatprep.subr.mxu0 %v1175_v20  ;;  %v1225_v18 = vld [vmem:[#allocation7 + $0x248] sm:$0xff]  ;;  %v1240_v19 = vld [vmem:[#allocation7 + $0x2c0] sm:$0xff] }
 0x131   :  { %1871 = vmatprep.subr.mxu1 %v1207_v21  ;;  %1837 = vmatpush3.msra.mxu0 %v1159_v22  ;;  %v1224_v20 = vld [vmem:[#allocation7 + $0x240] sm:$0xff]  ;;  %v1239_v21 = vld [vmem:[#allocation7 + $0x2b8] sm:$0xff] }
 0x132   :  { %1872 = vmatpush3.msra.mxu1 %v1191_v23  ;;  %1838 = vmatprep.subr.mxu0 %v1174_v24  ;;  %v1223_v22 = vld [vmem:[#allocation7 + $0x238] sm:$0xff]  ;;  %v1238_v23 = vld [vmem:[#allocation7 + $0x2b0] sm:$0xff] }
 0x133   :  { %1873 = vmatprep.subr.mxu1 %v1206_v25  ;;  %1839 = vmatpush3.msra.mxu0 %v1158_v26  ;;  %v1222_v24 = vld [vmem:[#allocation7 + $0x230] sm:$0xff]  ;;  %v1237_v25 = vld [vmem:[#allocation7 + $0x2a8] sm:$0xff] }
 0x134   :  { %1874 = vmatpush3.msra.mxu1 %v1190_v27  ;;  %1840 = vmatprep.subr.mxu0 %v1173_v28  ;;  %v1221_v26 = vld [vmem:[#allocation7 + $0x228] sm:$0xff]  ;;  %v1236_v27 = vld [vmem:[#allocation7 + $0x2a0] sm:$0xff]  ;;  %v522_v28 = vsub.s32 2, %v2244_v51 }
 0x135   :  { %1875 = vmatprep.subr.mxu1 %v1205_v29  ;;  %1841 = vmatpush3.msra.mxu0 %v1157_v30  ;;  %v713_v59 = vpop.f32.mrf.mxu1  ;;  %v1220_v29 = vld [vmem:[#allocation7 + $0x220] sm:$0xff]  ;;  %v1235_v30 = vld [vmem:[#allocation7 + $0x298] sm:$0xff] }
 0x136   :  { %1876 = vmatpush3.msra.mxu1 %v1189_v31  ;;  %1842 = vmatprep.subr.mxu0 %v1172_v32  ;;  %v526_v31 = vsub.s32 3, %v2244_v51  ;;  %v1219_v32 = vld [vmem:[#allocation7 + $0x218] sm:$0xff] }
 0x137   :  { %1877 = vmatprep.subr.mxu1 %v1204_v33  ;;  %1843 = vmatpush3.msra.mxu0 %v1156_v34  ;;  %v715_v3 = vpop.f32.mrf.mxu1  ;;  %v1234_v33 = vld [vmem:[#allocation7 + $0x290] sm:$0xff]  ;;  %v523_v34 = vrot.slane %v2292_v56, %v522_v28 }
 0x138   :  { %1878 = vmatpush3.msra.mxu1 %v1188_v35  ;;  %1844 = vmatprep.subr.mxu0 %v1171_v36  ;;  %v1218_v35 = vld [vmem:[#allocation7 + $0x210] sm:$0xff]  ;;  %v1233_v36 = vld [vmem:[#allocation7 + $0x288] sm:$0xff] }
 0x139   :  { %1879 = vmatprep.subr.mxu1 %v1203_v37  ;;  %1845 = vmatpush3.msra.mxu0 %v1155_v38  ;;  %v527_v37 = vrot.slane %v2292_v56, %v526_v31  ;;  %v1217_v38 = vld [vmem:[#allocation7 + $0x208] sm:$0xff] }
 0x13a   :  { %1880 = vmatpush3.msra.mxu1 %v1187_v39  ;;  %1846 = vmatprep.subr.mxu0 %v1170_v40  ;;  %v1232_v40 = vld [vmem:[#allocation7 + $0x280] sm:$0xff] }
 0x13b   :  { %1881 = vmatprep.subr.mxu1 %v1202_v41  ;;  %1847 = vmatpush3.msra.mxu0 %v1154_v42  ;;  %v1216_v42 = vld [vmem:[#allocation7 + $0x200] sm:$0xff] }
 0x13c   :  { %1882 = vmatpush3.msra.mxu1 %v1186_v43  ;;  %1848 = vmatprep.subr.mxu0 %v1169_v44 }
 0x13d   :  { %1883 = vmatprep.subr.mxu1 %v1201_v45  ;;  %1849 = vmatpush3.msra.mxu0 %v1153_v46 }
 0x13e   :  { %1884 = vmatpush3.msra.mxu1 %v1185_v47  ;;  %1850 = vmatprep.subr.mxu0 %v1168_v48 }
 0x13f   :  { %1885 = vmatprep.subr.mxu1 %v1200_v49  ;;  %1851 = vmatpush3.msra.mxu0 %v1152_v50 }
 0x140   :  { %1886 = vmatpush3.msra.mxu1 %v1184_v52  ;;  %1890 = vmatprep.subr.mxu0 %v1247_v53  ;;  %v1263_v52 = vld [vmem:[#allocation7 + $0x378] sm:$0xff]  ;;  %v1278_v53 = vld [vmem:[#allocation7 + $0x3f0] sm:$0xff] }
 0x141   :  { %1925 = vmatprep.subr.mxu1 %v1279_v54  ;;  %v1262_v54 = vld [vmem:[#allocation7 + $0x370] sm:$0xff] }
 0x152   :  { %v642_v61 = vpop.f32.mrf.mxu0 }
 0x153   :  { %v643_v62 = vadd.f32 %v642_v61, %v515_v58  ;;  %v1277_v58 = vld [vmem:[#allocation7 + $0x3e8] sm:$0xff]  ;;  %v1260_v61 = vld [vmem:[#allocation7 + $0x360] sm:$0xff] }
 0x154   :  { %v644_v17 = vpop.f32.mrf.mxu0 }
 0x155   :  { %v645_v0 = vadd.f32 %v644_v17, %v519_v60  ;;  %v714_v8 = vadd.f32 %v713_v59, %v643_v62  ;;  %v1261_v60 = vld [vmem:[#allocation7 + $0x368] sm:$0xff]  ;;  %v1276_v59 = vld [vmem:[#allocation7 + $0x3e0] sm:$0xff]  ;;  %v1275_v62 = vld [vmem:[#allocation7 + $0x3d8] sm:$0xff] }
 0x156   :  { %v1259_v17 = vld [vmem:[#allocation7 + $0x358] sm:$0xff] }
 0x157   :  { %v716_v1 = vadd.f32 %v715_v3, %v645_v0  ;;  %v1144_v4 = vmax.f32 %v714_v8, 0.0  ;;  %v1274_v0 = vld [vmem:[#allocation7 + $0x3d0] sm:$0xff]  ;;  %v1273_v8 = vld [vmem:[#allocation7 + $0x3c8] sm:$0xff] }
 0x158   :  { %v1258_v3 = vld [vmem:[#allocation7 + $0x350] sm:$0xff] }
 0x159   :  { %v1145_v2 = vmax.f32 %v716_v1, 0.0  ;;  %v1257_v1 = vld [vmem:[#allocation7 + $0x348] sm:$0xff] }
 0x15b   :  { %1351 = vmatprep.mubr.f32.mxu0 %v1145_v2  ;;  %v1272_v2 = vld [vmem:[#allocation7 + $0x3c0] sm:$0xff] }
 0x15c   :  { %1352 = vmatmul.mubr.f32.vlgmr.msra.gmra.mxu0 %v1144_v4  ;;  %v1256_v4 = vld [vmem:[#allocation7 + $0x340] sm:$0xff] }
 0x15d   :  { %1891 = vmatpush3.msra.mxu0 %v1231_v5  ;;  %v1271_v5 = vld [vmem:[#allocation7 + $0x3b8] sm:$0xff] }
 0x15e   :  { %1892 = vmatprep.subr.mxu0 %v1246_v6  ;;  %v1255_v6 = vld [vmem:[#allocation7 + $0x338] sm:$0xff] }
 0x15f   :  { %1893 = vmatpush3.msra.mxu0 %v1230_v7  ;;  %v1270_v7 = vld [vmem:[#allocation7 + $0x3b0] sm:$0xff] }
 0x160   :  { %1894 = vmatprep.subr.mxu0 %v1245_v9  ;;  %v1254_v9 = vld [vmem:[#allocation7 + $0x330] sm:$0xff] }
 0x161   :  { %1895 = vmatpush3.msra.mxu0 %v1229_v10  ;;  %v1269_v10 = vld [vmem:[#allocation7 + $0x3a8] sm:$0xff] }
 0x162   :  { %1896 = vmatprep.subr.mxu0 %v1244_v11  ;;  %v1253_v11 = vld [vmem:[#allocation7 + $0x328] sm:$0xff] }
 0x163   :  { %1897 = vmatpush3.msra.mxu0 %v1228_v12  ;;  %v1268_v12 = vld [vmem:[#allocation7 + $0x3a0] sm:$0xff] }
 0x164   :  { %1898 = vmatprep.subr.mxu0 %v1243_v63  ;;  %v1252_v63 = vld [vmem:[#allocation7 + $0x320] sm:$0xff] }
 0x165   :  { %1899 = vmatpush3.msra.mxu0 %v1227_v13  ;;  %v1267_v13 = vld [vmem:[#allocation7 + $0x398] sm:$0xff] }
 0x166   :  { %1900 = vmatprep.subr.mxu0 %v1242_v14  ;;  %v1251_v14 = vld [vmem:[#allocation7 + $0x318] sm:$0xff] }
 0x167   :  { %1901 = vmatpush3.msra.mxu0 %v1226_v15  ;;  %v1266_v15 = vld [vmem:[#allocation7 + $0x390] sm:$0xff] }
 0x168   :  { %1902 = vmatprep.subr.mxu0 %v1241_v16  ;;  %v1250_v16 = vld [vmem:[#allocation7 + $0x310] sm:$0xff] }
 0x169   :  { %1903 = vmatpush3.msra.mxu0 %v1225_v18  ;;  %v1265_v18 = vld [vmem:[#allocation7 + $0x388] sm:$0xff] }
 0x16a   :  { %1904 = vmatprep.subr.mxu0 %v1240_v19  ;;  %v1249_v19 = vld [vmem:[#allocation7 + $0x308] sm:$0xff] }
 0x16b   :  { %1905 = vmatpush3.msra.mxu0 %v1224_v20  ;;  %v1264_v20 = vld [vmem:[#allocation7 + $0x380] sm:$0xff] }
 0x16c   :  { %1906 = vmatprep.subr.mxu0 %v1239_v21  ;;  %v1248_v21 = vld [vmem:[#allocation7 + $0x300] sm:$0xff] }
 0x16d   :  { %1907 = vmatpush3.msra.mxu0 %v1223_v22  ;;  %v530_v22 = vsub.s32 4, %v2244_v51 }
 0x16e   :  { %1908 = vmatprep.subr.mxu0 %v1238_v23  ;;  %v534_v23 = vsub.s32 5, %v2244_v51 }
 0x16f   :  { %1909 = vmatpush3.msra.mxu0 %v1222_v24  ;;  %v531_v24 = vrot.slane %v2292_v56, %v530_v22  ;;  %v1716_v22 = vld [vmem:[%s2426_s7 + $0xf8] sm:$0xff] }
 0x170   :  { %1910 = vmatprep.subr.mxu0 %v1237_v25  ;;  %v535_v25 = vrot.slane %v2292_v56, %v534_v23  ;;  %v1700_v23 = vld [vmem:[%s2426_s7 + $0x78] sm:$0xff] }
 0x171   :  { %1911 = vmatpush3.msra.mxu0 %v1221_v26 }
 0x172   :  { %1912 = vmatprep.subr.mxu0 %v1236_v27 }
 0x173   :  { %1913 = vmatpush3.msra.mxu0 %v1220_v29 }
 0x174   :  { %1914 = vmatprep.subr.mxu0 %v1235_v30 }
 0x175   :  { %1915 = vmatpush3.msra.mxu0 %v1219_v32 }
 0x176   :  { %1916 = vmatprep.subr.mxu0 %v1234_v33 }
 0x177   :  { %v784_v39 = vpop.f32.mrf.mxu1  ;;  %1917 = vmatpush3.msra.mxu0 %v1218_v35 }
 0x178   :  { %v785_v41 = vadd.f32 %v784_v39, %v523_v34  ;;  %1918 = vmatprep.subr.mxu0 %v1233_v36  ;;  %v538_v36 = vsub.s32 6, %v2244_v51 }
 0x179   :  { %v855_v43 = vpop.f32.mrf.mxu0  ;;  %v786_v44 = vpop.f32.mrf.mxu1  ;;  %1919 = vmatpush3.msra.mxu0 %v1217_v38 }
 0x17a   :  { %v787_v45 = vadd.f32 %v786_v44, %v527_v37  ;;  %1920 = vmatprep.subr.mxu0 %v1232_v40  ;;  %v856_v46 = vadd.f32 %v855_v43, %v785_v41  ;;  %v542_v37 = vsub.s32 7, %v2244_v51  ;;  %v539_v38 = vrot.slane %v2292_v56, %v538_v36  ;;  %v1709_v36 = vld [vmem:[%s2426_s7 + $0xc0] sm:$0xff] }
 0x17b   :  { %v857_v47 = vpop.f32.mrf.mxu0  ;;  %1921 = vmatpush3.msra.mxu0 %v1216_v42 }
 0x17c   :  { %v858_v48 = vadd.f32 %v857_v47, %v787_v45  ;;  %v1146_v50 = vmax.f32 %v856_v46, 0.0  ;;  %v543_v39 = vrot.slane %v2292_v56, %v542_v37  ;;  %v1594_v56 = vld [vmem:[#allocation10 + $0xd0] sm:$0xff] }
 0x17d   :  { %v1693_v37 = vld [vmem:[%s2426_s7 + $0x40] sm:$0xff] }
 0x17e   :  { %v1147_v49 = vmax.f32 %v858_v48, 0.0 }
 0x180   :  { %1421 = vmatprep.mubr.f32.mxu1 %v1147_v49 }
 0x181   :  { %1422 = vmatmul.mubr.f32.vlgmr.msra.gmra.mxu1 %v1146_v50  ;;  %v1599_v50 = vld [vmem:[#allocation10 + $0xf8] sm:$0xff] }
 0x182   :  { %1926 = vmatpush3.msra.mxu1 %v1263_v52  ;;  %v1598_v52 = vld [vmem:[#allocation10 + $0xf0] sm:$0xff]  ;;  %1612 = vmatprep.subr.mxu0 %v1599_v50 }
 0x183   :  { %1927 = vmatprep.subr.mxu1 %v1278_v53  ;;  %v1597_v53 = vld [vmem:[#allocation10 + $0xe8] sm:$0xff] }
 0x184   :  { %1928 = vmatpush3.msra.mxu1 %v1262_v54  ;;  %v1596_v54 = vld [vmem:[#allocation10 + $0xe0] sm:$0xff] }
 0x185   :  { %1929 = vmatprep.subr.mxu1 %v1277_v58  ;;  %v1595_v58 = vld [vmem:[#allocation10 + $0xd8] sm:$0xff] }
 0x186   :  { %1930 = vmatpush3.msra.mxu1 %v1261_v60  ;;  %v1593_v60 = vld [vmem:[#allocation10 + $0xc8] sm:$0xff] }
 0x187   :  { %1931 = vmatprep.subr.mxu1 %v1276_v59  ;;  %v1592_v59 = vld [vmem:[#allocation10 + $0xc0] sm:$0xff] }
 0x188   :  { %1932 = vmatpush3.msra.mxu1 %v1260_v61  ;;  %v1591_v61 = vld [vmem:[#allocation10 + $0xb8] sm:$0xff] }
 0x189   :  { %1933 = vmatprep.subr.mxu1 %v1275_v62  ;;  %v1590_v62 = vld [vmem:[#allocation10 + $0xb0] sm:$0xff] }
 0x18a   :  { %1934 = vmatpush3.msra.mxu1 %v1259_v17  ;;  %v1589_v17 = vld [vmem:[#allocation10 + $0xa8] sm:$0xff] }
 0x18b   :  { %1935 = vmatprep.subr.mxu1 %v1274_v0  ;;  %v1588_v0 = vld [vmem:[#allocation10 + $0xa0] sm:$0xff] }
 0x18c   :  { %1936 = vmatpush3.msra.mxu1 %v1258_v3  ;;  %v1587_v3 = vld [vmem:[#allocation10 + $0x98] sm:$0xff] }
 0x18d   :  { %1937 = vmatprep.subr.mxu1 %v1273_v8  ;;  %v1586_v8 = vld [vmem:[#allocation10 + $0x90] sm:$0xff] }
 0x18e   :  { %1938 = vmatpush3.msra.mxu1 %v1257_v1  ;;  %v1585_v1 = vld [vmem:[#allocation10 + $0x88] sm:$0xff] }
 0x18f   :  { %1939 = vmatprep.subr.mxu1 %v1272_v2  ;;  %v1584_v2 = vld [vmem:[#allocation10 + $0x80] sm:$0xff] }
 0x190   :  { %1940 = vmatpush3.msra.mxu1 %v1256_v4  ;;  %v1583_v4 = vld [vmem:[#allocation10 + $0x78] sm:$0xff] }
 0x191   :  { %1941 = vmatprep.subr.mxu1 %v1271_v5  ;;  %v1582_v5 = vld [vmem:[#allocation10 + $0x70] sm:$0xff] }
 0x192   :  { %1942 = vmatpush3.msra.mxu1 %v1255_v6  ;;  %v1581_v6 = vld [vmem:[#allocation10 + $0x68] sm:$0xff] }
 0x193   :  { %1943 = vmatprep.subr.mxu1 %v1270_v7  ;;  %v1580_v7 = vld [vmem:[#allocation10 + $0x60] sm:$0xff] }
 0x194   :  { %1944 = vmatpush3.msra.mxu1 %v1254_v9  ;;  %v1579_v9 = vld [vmem:[#allocation10 + $0x58] sm:$0xff] }
 0x195   :  { %1945 = vmatprep.subr.mxu1 %v1269_v10  ;;  %v1578_v10 = vld [vmem:[#allocation10 + $0x50] sm:$0xff] }
 0x196   :  { %1946 = vmatpush3.msra.mxu1 %v1253_v11  ;;  %v1577_v11 = vld [vmem:[#allocation10 + $0x48] sm:$0xff] }
 0x197   :  { %1947 = vmatprep.subr.mxu1 %v1268_v12  ;;  %v1576_v12 = vld [vmem:[#allocation10 + $0x40] sm:$0xff] }
 0x198   :  { %1948 = vmatpush3.msra.mxu1 %v1252_v63  ;;  %v1575_v63 = vld [vmem:[#allocation10 + $0x38] sm:$0xff] }
 0x199   :  { %1949 = vmatprep.subr.mxu1 %v1267_v13  ;;  %v1574_v13 = vld [vmem:[#allocation10 + $0x30] sm:$0xff] }
 0x19a   :  { %1950 = vmatpush3.msra.mxu1 %v1251_v14  ;;  %v1573_v14 = vld [vmem:[#allocation10 + $0x28] sm:$0xff] }
 0x19b   :  { %1951 = vmatprep.subr.mxu1 %v1266_v15  ;;  %v1572_v15 = vld [vmem:[#allocation10 + $0x20] sm:$0xff] }
 0x19c   :  { %1952 = vmatpush3.msra.mxu1 %v1250_v16  ;;  %v1571_v16 = vld [vmem:[#allocation10 + $0x18] sm:$0xff] }
 0x19d   :  { %1953 = vmatprep.subr.mxu1 %v1265_v18  ;;  %v997_v26 = vpop.f32.mrf.mxu1  ;;  %v1570_v18 = vld [vmem:[#allocation10 + $0x10] sm:$0xff] }
 0x19e   :  { %1954 = vmatpush3.msra.mxu1 %v1249_v19  ;;  %v1569_v19 = vld [vmem:[#allocation10 + $0x8] sm:$0xff] }
 0x19f   :  { %1955 = vmatprep.subr.mxu1 %v1264_v20  ;;  %v999_v31 = vpop.f32.mrf.mxu1  ;;  %v1568_v20 = vld [vmem:[#allocation10] sm:$0xff] }
 0x1a0   :  { %1956 = vmatpush3.msra.mxu1 %v1248_v21  ;;  %v2174_v21 = vmov 0.0  }
 0x1a1   :  { %1960 = vmatprep.subr.mxu1 %v1716_v22 }
 0x1ba   :  { %v926_v27 = vpop.f32.mrf.mxu0 }
 0x1bb   :  { %v927_v28 = vadd.f32 %v926_v27, %v531_v24  ;;  %v1715_v24 = vld [vmem:[%s2426_s7 + $0xf0] sm:$0xff]  ;;  %v1698_v27 = vld [vmem:[%s2426_s7 + $0x68] sm:$0xff] }
 0x1bc   :  { %v928_v29 = vpop.f32.mrf.mxu0 }
 0x1bd   :  { %v929_v30 = vadd.f32 %v928_v29, %v535_v25  ;;  %v998_v32 = vadd.f32 %v997_v26, %v927_v28  ;;  %v1699_v25 = vld [vmem:[%s2426_s7 + $0x70] sm:$0xff]  ;;  %v1714_v26 = vld [vmem:[%s2426_s7 + $0xe8] sm:$0xff]  ;;  %v1713_v28 = vld [vmem:[%s2426_s7 + $0xe0] sm:$0xff] }
 0x1be   :  { %v1697_v29 = vld [vmem:[%s2426_s7 + $0x60] sm:$0xff] }
 0x1bf   :  { %v1000_v33 = vadd.f32 %v999_v31, %v929_v30  ;;  %v1148_v35 = vmax.f32 %v998_v32, 0.0  ;;  %v1712_v30 = vld [vmem:[%s2426_s7 + $0xd8] sm:$0xff]  ;;  %v1711_v32 = vld [vmem:[%s2426_s7 + $0xd0] sm:$0xff] }
 0x1c0   :  { %v1696_v31 = vld [vmem:[%s2426_s7 + $0x58] sm:$0xff] }
 0x1c1   :  { %v1149_v34 = vmax.f32 %v1000_v33, 0.0  ;;  %v1695_v33 = vld [vmem:[%s2426_s7 + $0x50] sm:$0xff] }
 0x1c3   :  { %1491 = vmatprep.mubr.f32.mxu0 %v1149_v34  ;;  %v1710_v34 = vld [vmem:[%s2426_s7 + $0xc8] sm:$0xff] }
 0x1c4   :  { %1492 = vmatmul.mubr.f32.vlgmr.msra.gmra.mxu0 %v1148_v35  ;;  %v1694_v35 = vld [vmem:[%s2426_s7 + $0x48] sm:$0xff] }
 0x1c5   :  { %1613 = vmatpush1.msra.mxu0 %v1598_v52  ;;  %1676 = vmatprep.mubr.f32.mxu0 %v2174_v21  ;;  %v1819_v21 = vld [vmem:[%s2427_s8] ss:$0 sm:$0xff] }
 0x1c6   :  { %1614 = vmatprep.subr.mxu0 %v1597_v53  ;;  %v1818_v53 = vld [vmem:[#allocation8] ss:$0 sm:$0xff] }
 0x1c7   :  { %1615 = vmatpush1.msra.mxu0 %v1596_v54 }
 0x1c8   :  { %1616 = vmatprep.subr.mxu0 %v1595_v58 }
 0x1c9   :  { %1617 = vmatpush1.msra.mxu0 %v1594_v56 }
 0x1ca   :  { %1618 = vmatprep.subr.mxu0 %v1593_v60 }
 0x1cb   :  { %1619 = vmatpush1.msra.mxu0 %v1592_v59 }
 0x1cc   :  { %1620 = vmatprep.subr.mxu0 %v1591_v61 }
 0x1cd   :  { %1621 = vmatpush1.msra.mxu0 %v1590_v62 }
 0x1ce   :  { %1622 = vmatprep.subr.mxu0 %v1589_v17 }
 0x1cf   :  { %1623 = vmatpush1.msra.mxu0 %v1588_v0 }
 0x1d0   :  { %1624 = vmatprep.subr.mxu0 %v1587_v3 }
 0x1d1   :  { %1625 = vmatpush1.msra.mxu0 %v1586_v8 }
 0x1d2   :  { %1626 = vmatprep.subr.mxu0 %v1585_v1  ;;  %v1704_v1 = vld [vmem:[%s2426_s7 + $0x98] sm:$0xff] }
 0x1d3   :  { %1627 = vmatpush1.msra.mxu0 %v1584_v2  ;;  %v1688_v2 = vld [vmem:[%s2426_s7 + $0x18] sm:$0xff] }
 0x1d4   :  { %1628 = vmatprep.subr.mxu0 %v1583_v4  ;;  %v1703_v4 = vld [vmem:[%s2426_s7 + $0x90] sm:$0xff] }
 0x1d5   :  { %1629 = vmatpush1.msra.mxu0 %v1582_v5  ;;  %v1687_v5 = vld [vmem:[%s2426_s7 + $0x10] sm:$0xff] }
 0x1d6   :  { %1630 = vmatprep.subr.mxu0 %v1581_v6  ;;  %v1702_v6 = vld [vmem:[%s2426_s7 + $0x88] sm:$0xff] }
 0x1d7   :  { %1631 = vmatpush1.msra.mxu0 %v1580_v7  ;;  %v1686_v7 = vld [vmem:[%s2426_s7 + $0x8] sm:$0xff] }
 0x1d8   :  { %1632 = vmatprep.subr.mxu0 %v1579_v9  ;;  %v1701_v9 = vld [vmem:[%s2426_s7 + $0x80] sm:$0xff] }
 0x1d9   :  { %1633 = vmatpush1.msra.mxu0 %v1578_v10  ;;  %v1685_v10 = vld [vmem:[%s2426_s7] sm:$0xff] }
 0x1da   :  { %1634 = vmatprep.subr.mxu0 %v1577_v11  ;;  %v1600_v11 = vld [vmem:[#allocation11] sm:$0x3] }
 0x1db   :  { %1635 = vmatpush1.msra.mxu0 %v1576_v12  ;;  %v1605_v12 = vrot.slane %v1600_v11, %v514_v55 }
 0x1dc   :  { %1636 = vmatprep.subr.mxu0 %v1575_v63  ;;  %v1609_v63 = vrot.slane %v1600_v11, %v518_v57 }
 0x1dd   :  { %1637 = vmatpush1.msra.mxu0 %v1574_v13 }
 0x1de   :  { %1638 = vmatprep.subr.mxu0 %v1573_v14 }
 0x1df   :  { %v1068_v40 = vpop.f32.mrf.mxu1  ;;  %1639 = vmatpush1.msra.mxu0 %v1572_v15 }
 0x1e0   :  { %v1139_v41 = vpop.f32.mrf.mxu0  ;;  %v1069_v42 = vadd.f32 %v1068_v40, %v539_v38  ;;  %1640 = vmatprep.subr.mxu0 %v1571_v16  ;;  %v1708_v38 = vld [vmem:[%s2426_s7 + $0xb8] sm:$0xff]  ;;  %v1707_v40 = vld [vmem:[%s2426_s7 + $0xb0] sm:$0xff] }
 0x1e1   :  { %v1070_v43 = vpop.f32.mrf.mxu1  ;;  %1641 = vmatpush1.msra.mxu0 %v1570_v18 }
 0x1e2   :  { %v1071_v44 = vadd.f32 %v1070_v43, %v543_v39  ;;  %v1140_v45 = vadd.f32 %v1139_v41, %v1069_v42  ;;  %v1141_v46 = vpop.f32.mrf.mxu0  ;;  %1642 = vmatprep.subr.mxu0 %v1569_v19  ;;  %v1692_v39 = vld [vmem:[%s2426_s7 + $0x38] sm:$0xff]  ;;  %v1691_v41 = vld [vmem:[%s2426_s7 + $0x30] sm:$0xff]  ;;  %v1706_v42 = vld [vmem:[%s2426_s7 + $0xa8] sm:$0xff] }
 0x1e3   :  { %1643 = vmatpush1.msra.mxu0 %v1568_v20  ;;  %v1690_v43 = vld [vmem:[%s2426_s7 + $0x28] sm:$0xff] }
 0x1e4   :  { %v1142_v47 = vadd.f32 %v1141_v46, %v1071_v44  ;;  %v1150_v49 = vmax.f32 %v1140_v45, 0.0  ;;  %v1705_v44 = vld [vmem:[%s2426_s7 + $0xa0] sm:$0xff] }
 0x1e5   :  { %v1689_v45 = vld [vmem:[%s2426_s7 + $0x20] sm:$0xff] }
 0x1e6   :  { %v1151_v48 = vmax.f32 %v1142_v47, 0.0 }
 0x1e8   :  { %1561 = vmatprep.mubr.f32.mxu1 %v1151_v48 }
 0x1e9   :  { %1562 = vmatmul.mubr.f32.vlgmr.msra.gmra.mxu1 %v1150_v49 }
 0x1ea   :  { %1961 = vmatpush3.msra.mxu1 %v1700_v23 }
 0x1eb   :  { %1962 = vmatprep.subr.mxu1 %v1715_v24 }
 0x1ec   :  { %1963 = vmatpush3.msra.mxu1 %v1699_v25 }
 0x1ed   :  { %1964 = vmatprep.subr.mxu1 %v1714_v26 }
 0x1ee   :  { %1965 = vmatpush3.msra.mxu1 %v1698_v27 }
 0x1ef   :  { %1966 = vmatprep.subr.mxu1 %v1713_v28 }
 0x1f0   :  { %1967 = vmatpush3.msra.mxu1 %v1697_v29 }
 0x1f1   :  { %1968 = vmatprep.subr.mxu1 %v1712_v30 }
 0x1f2   :  { %1969 = vmatpush3.msra.mxu1 %v1696_v31 }
 0x1f3   :  { %1970 = vmatprep.subr.mxu1 %v1711_v32 }
 0x1f4   :  { %1971 = vmatpush3.msra.mxu1 %v1695_v33 }
 0x1f5   :  { %1972 = vmatprep.subr.mxu1 %v1710_v34 }
 0x1f6   :  { %1973 = vmatpush3.msra.mxu1 %v1694_v35 }
 0x1f7   :  { %1974 = vmatprep.subr.mxu1 %v1709_v36 }
 0x1f8   :  { %1975 = vmatpush3.msra.mxu1 %v1693_v37 }
 0x1f9   :  { %1976 = vmatprep.subr.mxu1 %v1708_v38 }
 0x1fa   :  { %1977 = vmatpush3.msra.mxu1 %v1692_v39 }
 0x1fb   :  { %1978 = vmatprep.subr.mxu1 %v1707_v40 }
 0x1fc   :  { %1979 = vmatpush3.msra.mxu1 %v1691_v41 }
 0x1fd   :  { %1980 = vmatprep.subr.mxu1 %v1706_v42 }
 0x1fe   :  { %1981 = vmatpush3.msra.mxu1 %v1690_v43 }
 0x1ff   :  { %1982 = vmatprep.subr.mxu1 %v1705_v44 }
 0x200   :  { %1983 = vmatpush3.msra.mxu1 %v1689_v45 }
 0x201   :  { %1984 = vmatprep.subr.mxu1 %v1704_v1 }
 0x202   :  { %1985 = vmatpush3.msra.mxu1 %v1688_v2 }
 0x203   :  { %1986 = vmatprep.subr.mxu1 %v1703_v4 }
 0x204   :  { %1987 = vmatpush3.msra.mxu1 %v1687_v5 }
 0x205   :  { %1988 = vmatprep.subr.mxu1 %v1702_v6 }
 0x206   :  { %1989 = vmatpush3.msra.mxu1 %v1686_v7 }
 0x207   :  { %1990 = vmatprep.subr.mxu1 %v1701_v9 }
 0x208   :  { %1991 = vmatpush3.msra.mxu1 %v1685_v10 }
 0x21c   :  { %v1852_v46 = vpop.f32.mrf.mxu0 }
 0x21e   :  { %v1853_v47 = vpop.f32.mrf.mxu0 }
 0x21f   :  { %v1854_v52 = vadd.f32 %v1853_v47, %v1852_v46 }
 0x221   :  { %v1354_v56 = vadd.f32 %v1854_v52, %v1818_v53 }
 0x241   :  { %v1887_v48 = vpop.f32.mrf.mxu1 }
 0x243   :  { %v1888_v50 = vpop.f32.mrf.mxu1 }
 0x244   :  { %v1889_v58 = vadd.f32 %v1888_v50, %v1887_v48 }
 0x246   :  { %v1424_v61 = vadd.f32 %v1889_v58, %v1354_v56 }
 0x284   :  { %v1922_v49 = vpop.f32.mrf.mxu0 }
 0x286   :  { %v1923_v54 = vpop.f32.mrf.mxu0 }
 0x287   :  { %v1924_v60 = vadd.f32 %v1923_v54, %v1922_v49 }
 0x289   :  { %v1494_v17 = vadd.f32 %v1924_v60, %v1424_v61 }
 0x2a9   :  { %v1957_v59 = vpop.f32.mrf.mxu1 }
 0x2ab   :  { %v1958_v62 = vpop.f32.mrf.mxu1 }
 0x2ac   :  { %v1959_v0 = vadd.f32 %v1958_v62, %v1957_v59 }
 0x2ae   :  { %v1564_v3 = vadd.f32 %v1959_v0, %v1494_v17 }
 0x2b0   :  { %v1567_v8 = vmax.f32 %v1564_v3, 0.0 }
 0x2b2   :  { %1677 = vmatmul.mubr.f32.vlgmr.msra.gmra.mxu0 %v1567_v8 }
 0x372   :  { %v1678_v13 = vpop.f32.mrf.mxu0 }
 0x373   :  { %v1679_v14 = vadd.f32 %v1678_v13, %v1605_v12 }
 0x374   :  { %v1680_v15 = vpop.f32.mrf.mxu0 }
 0x375   :  { %v1681_v16 = vadd.f32 %v1680_v15, %v1609_v63  ;;  %v1683_v19 = vmax.f32 %v1679_v14, 0.0 }
 0x377   :  { %v1684_v18 = vmax.f32 %v1681_v16, 0.0 }
 0x379   :  { %1788 = vmatprep.mubr.f32.mxu1 %v1684_v18 }
 0x37a   :  { %1789 = vmatmul.mubr.f32.vlgmr.msra.gmra.mxu1 %v1683_v19 }
 0x43a   :  { %v1992_v20 = vpop.f32.mrf.mxu1 }
 0x43c   :  { %v1993_v22 = vpop.f32.mrf.mxu1 }
 0x43d   :  { %v1994_v55 = vadd.f32 %v1993_v22, %v1992_v20 }
 0x43f   :  { %v1791_v51 = vadd.f32 %v1994_v55, %v1819_v21 }
 0x441   :  { %1795 = vst.msk [vmem:[#allocation13] sm:$0x3] %vm1794_vm1, %v1791_v51 }
 0x442   :  { %2142 = shalt.err (!%p2139_p6)
}
 0x443   :  { %1805 = dma.vmem_to_hbm [thread:$0]  %s1803_s28, 32, %s2428_s9, [#allocation4]  }
 0x444   :  { %2159 = dma.done.wait [#allocation4], 32  }
 0x445   :  { %2160 = vsyncadd [#allocation4], 4294967264 }
 0x446   :  { %1809 = vsyncpa [#allocation3], 1 }
 0x447   :  { %1810 = vsyncpa [#allocation6], 1 }
 0x448   :  { %1811 = vsyncpa [#allocation9], 1 }
 0x449   :  { %1812 = vsyncpa [#allocation12], 1 }
 0x44a   :  { %1813 = vsyncpa [#allocation4], 1 }

</bundles_post_ra>
